<compile_context>
chip_gen: v5e
topology: v5e:2x2
jax: 0.10.0
libtpu: 0.0.40
codegen_flags: <defaults>
</compile_context>

<pallas_src>
import jax
import jax.numpy as jnp
from jax.experimental import pallas as pl
from jax.experimental.pallas import tpu as pltpu  # noqa: F401  (kept for TPU-specific tuning hooks)

# ----------------------------- config -----------------------------
VOCAB = 100
TYPE_VOCAB = 2
MAX_POS = 16
HIDDEN = 32
N_HEADS = 4
HEAD_DIM = HIDDEN // N_HEADS
INTERMEDIATE = 64
N_LAYERS = 2
LN_EPS = 1e-12
OUT_PAD = 128            # lane-pad the scalar logit so the final store is a full-lane vst

# packed embedding table layout (rows): [word | pad | pos | type | pad]
EMB_ROWS = 128
POS_OFF = 104            # 8-aligned
TYPE_OFF = 120           # 8-aligned

# per-layer matmul slab column layout: [w_qkv | wo | wi | wo2^T]
W_SLAB_COLS = 4 * HIDDEN + 2 * INTERMEDIATE    # 96 + 32 + 64 + 64 = 256


# ------------------------- fused Pallas kernel -------------------------
def _bert_fused_kernel(ids_ref, tt_ref, mask_ref, emb_ref, misc_ref, w_ref, v_ref, out_ref):
    """Whole Bert_fn forward (all batch elements) entirely in VMEM/vregs."""
    B, S = mask_ref.shape
    BS = B * S
    f32 = jnp.float32

    def layernorm(y, g, b):
        mu = jnp.mean(y, axis=-1, keepdims=True)
        var = jnp.mean((y - mu) ** 2, axis=-1, keepdims=True)
        return (y - mu) * jax.lax.rsqrt(var + LN_EPS) * g + b

    def gelu(y):
        # TODO(synk): HF BERT uses exact erf-GELU; tanh approximation kept for a clean EUP lowering.
        return 0.5 * y * (1.0 + jnp.tanh(0.7978845608028654 * (y + 0.044715 * y * y * y)))

    # ---- fused embedding lookup: word one-hot matmul + tiled positions + type select ----
    emb_tab = emb_ref[...]                                               # (EMB_ROWS, H)
    ids = ids_ref[...]                                                   # (BS, 1) int32
    cols = jax.lax.broadcasted_iota(jnp.int32, (BS, EMB_ROWS), 1)
    onehot = (cols == ids).astype(f32)                                   # ids < VOCAB, so pad/pos/type rows never hot
    word = jnp.dot(onehot, emb_tab, preferred_element_type=f32)          # (BS, H)
    pos = jnp.concatenate([emb_tab[POS_OFF:POS_OFF + S, :]] * B, axis=0)  # (BS, H)
    typ = jnp.where(tt_ref[...] == 1,
                    emb_tab[TYPE_OFF + 1:TYPE_OFF + 2, :],
                    emb_tab[TYPE_OFF:TYPE_OFF + 1, :])                   # (BS, H)
    x = layernorm(word + pos + typ, misc_ref[0:1, :], misc_ref[1:2, :])  # (BS, H)

    # ---- additive attention-mask bias, built once for all (head, batch) pairs ----
    mask_f = mask_ref[...].astype(f32)                                   # (B, S)
    bias = ((1.0 - mask_f) * -10000.0).reshape(B, 1, S)
    bias_hb = jnp.concatenate([bias] * N_HEADS, axis=0)                  # (N_HEADS*B, 1, S)

    for l in range(N_LAYERS):
        wl = w_ref[l]                                                    # (H, 256) matmul slab
        vl = v_ref[l]                                                    # (8, 3H)  bias/LN rows

        # --- self-attention (fused QKV projection; 1/sqrt(d) pre-folded into Q weights) ---
        qkv = jnp.dot(x, wl[:, :3 * HIDDEN], preferred_element_type=f32) + vl[0:1, :3 * HIDDEN]
        qkv3 = qkv.reshape(B, S, 3 * HIDDEN)

        def to_heads(base):
            # one relayout: contiguous head lane-groups -> leading (head*batch) axis
            return jnp.concatenate(
                [qkv3[:, :, base + h * HEAD_DIM: base + (h + 1) * HEAD_DIM]
                 for h in range(N_HEADS)], axis=0)                       # (N_HEADS*B, S, HEAD_DIM)

        q_h = to_heads(0)
        k_h = to_heads(HIDDEN)
        v_h = to_heads(2 * HIDDEN)

        # head-batched scores + ONE softmax for the whole block.
        # No row-max subtraction: logits are tiny (0.02-scale weights, q pre-scaled) and
        # the -1e4 mask bias underflows to exactly 0 in f32.
        s = jnp.einsum('bqd,bkd->bqk', q_h, k_h, preferred_element_type=f32) + bias_hb
        p = jnp.exp(s)
        p = p * pl.reciprocal(jnp.sum(p, axis=-1, keepdims=True), approx=True)
        ctx_h = jnp.einsum('bqk,bkd->bqd', p, v_h, preferred_element_type=f32)   # (N_HEADS*B, S, D)

        ctx = jnp.concatenate([ctx_h[h * B:(h + 1) * B] for h in range(N_HEADS)],
                              axis=-1).reshape(BS, HIDDEN)
        attn = jnp.dot(ctx, wl[:, 3 * HIDDEN:4 * HIDDEN],
                       preferred_element_type=f32) + vl[1:2, :HIDDEN]
        x = layernorm(attn + x, vl[2:3, :HIDDEN], vl[3:4, :HIDDEN])

        # --- feed-forward (second matmul uses the transposed-weight form of dot_general) ---
        hmid = gelu(jnp.dot(x, wl[:, 4 * HIDDEN:4 * HIDDEN + INTERMEDIATE],
                            preferred_element_type=f32) + vl[4:5, :INTERMEDIATE])
        ffn = jax.lax.dot_general(hmid, wl[:, 4 * HIDDEN + INTERMEDIATE:],
                                  (((1,), (1,)), ((), ())),
                                  preferred_element_type=f32) + vl[5:6, :HIDDEN]
        x = layernorm(ffn + x, vl[6:7, :HIDDEN], vl[7:8, :HIDDEN])

    # ---- mean/max pool per batch + Linear(2H,1) computed on the VPU ----
    # Pooling includes padded positions, matching torch.mean / torch.max in the reference.
    # TODO(synk): nn.Dropout(0.3) on the pooled features is identity at inference (eval mode).
    wa = misc_ref[2:3, :]
    wm = misc_ref[3:4, :]
    bout = misc_ref[4:5, 0:1]
    logits = []
    for b in range(B):
        xb = x[b * S:(b + 1) * S, :]
        apool = jnp.mean(xb, axis=0, keepdims=True)                      # (1, H)
        mpool = jnp.max(xb, axis=0, keepdims=True)                       # (1, H)
        logits.append(jnp.sum(apool * wa + mpool * wm, axis=-1, keepdims=True) + bout)
    out_ref[...] = jnp.broadcast_to(jnp.concatenate(logits, axis=0),
                                    out_ref.shape).astype(out_ref.dtype)


# ---------------------- parameters (synthetic, pre-packed) ----------------------
def init_params(key):
    def normal(k, shape, scale=0.02):
        return scale * jax.random.normal(k, shape, dtype=jnp.float32)

    keys = jax.random.split(key, 9)
    word_emb = normal(keys[0], (VOCAB, HIDDEN))
    pos_emb = normal(keys[1], (MAX_POS, HIDDEN))
    type_emb = normal(keys[2], (TYPE_VOCAB, HIDDEN))

    w_qkv = normal(keys[3], (N_LAYERS, HIDDEN, 3 * HIDDEN))
    # Fold 1/sqrt(head_dim) into the Q columns (one-time host-side constant fold).
    w_qkv = w_qkv.at[:, :, :HIDDEN].multiply(HEAD_DIM ** -0.5)
    wo = normal(keys[4], (N_LAYERS, HIDDEN, HIDDEN))
    wi = normal(keys[5], (N_LAYERS, HIDDEN, INTERMEDIATE))
    wo2 = normal(keys[6], (N_LAYERS, INTERMEDIATE, HIDDEN))
    w_out_a = normal(keys[7], (HIDDEN,))
    w_out_m = normal(keys[8], (HIDDEN,))

    # packed embedding table: [word | pad | pos | type | pad]
    emb_tab = jnp.zeros((EMB_ROWS, HIDDEN), jnp.float32)
    emb_tab = emb_tab.at[:VOCAB].set(word_emb)
    emb_tab = emb_tab.at[POS_OFF:POS_OFF + MAX_POS].set(pos_emb)
    emb_tab = emb_tab.at[TYPE_OFF:TYPE_OFF + TYPE_VOCAB].set(type_emb)

    # misc slab (8, H): row0 emb-LN gamma, row1 emb-LN beta, row2/3 pool-head weights, row4 head bias
    misc = jnp.zeros((8, HIDDEN), jnp.float32)
    misc = misc.at[0].set(1.0)
    misc = misc.at[2].set(w_out_a)
    misc = misc.at[3].set(w_out_m)

    # per-layer matmul slab: [w_qkv | wo | wi | wo2^T] concatenated along lanes
    w_slab = jnp.concatenate([w_qkv, wo, wi, jnp.swapaxes(wo2, 1, 2)], axis=2)   # (L, H, 256)

    # per-layer bias / LN vector slab: one row each, lane-padded to 3H
    def row(v):
        return jnp.pad(v, ((0, 0), (0, 3 * HIDDEN - v.shape[-1])))

    zeros_h = jnp.zeros((N_LAYERS, HIDDEN), jnp.float32)
    ones_h = jnp.ones((N_LAYERS, HIDDEN), jnp.float32)
    v_slab = jnp.stack([
        jnp.zeros((N_LAYERS, 3 * HIDDEN), jnp.float32),              # b_qkv
        row(zeros_h),                                                # bo
        row(ones_h),                                                 # ln1 gamma
        row(zeros_h),                                                # ln1 beta
        row(jnp.zeros((N_LAYERS, INTERMEDIATE), jnp.float32)),       # bi
        row(zeros_h),                                                # bo2
        row(ones_h),                                                 # ln2 gamma
        row(zeros_h),                                                # ln2 beta
    ], axis=1)                                                       # (L, 8, 3H)

    return {"emb_tab": emb_tab, "misc": misc, "w_slab": w_slab, "v_slab": v_slab}


# --------------------------- forward pass ---------------------------
def bert_fn_forward(params, ids, mask, token_type_ids):
    B, S = ids.shape
    ids2 = ids.reshape(B * S, 1).astype(jnp.int32)
    tt2 = token_type_ids.reshape(B * S, 1).astype(jnp.int32)
    mask2 = mask.astype(jnp.int32)

    def vspec(shape):
        return pl.BlockSpec(shape, lambda _n=len(shape): (0,) * _n)

    # Single invocation (no grid): on v5e/v6e (one TensorCore) this avoids a serial
    # 2-step batch grid and its per-step overhead; on v7x the grid=(B,) "parallel"
    # two-TC split is the alternative to benchmark against the duplicated DMA prolog.
    out = pl.pallas_call(
        _bert_fused_kernel,
        in_specs=[vspec(ids2.shape), vspec(tt2.shape), vspec(mask2.shape),
                  vspec(params["emb_tab"].shape), vspec(params["misc"].shape),
                  vspec(params["w_slab"].shape), vspec(params["v_slab"].shape)],
        out_specs=vspec((B, OUT_PAD)),
        out_shape=jax.ShapeDtypeStruct((B, OUT_PAD), jnp.float32),
    )(ids2, tt2, mask2, params["emb_tab"], params["misc"],
      params["w_slab"], params["v_slab"])

    return out[:, :1]                                                # (B, 1)


# ------------------------------ main ------------------------------
if __name__ == "__main__":
    root = jax.random.PRNGKey(0)
    k_param, k_ids = jax.random.split(root)
    params = init_params(k_param)

    B, S = 2, 8
    ids = jax.random.randint(k_ids, (B, S), 0, VOCAB, dtype=jnp.int32)
    mask = jnp.ones((B, S), dtype=jnp.int32).at[:, 6:].set(0)        # last 2 tokens padded
    token_type_ids = jnp.zeros((B, S), dtype=jnp.int32).at[:, 4:].set(1)

    fwd = jax.jit(bert_fn_forward)
    p2 = fwd(params, ids, mask, token_type_ids)
    jax.block_until_ready(p2)
    assert p2.shape == (B, 1)
    print("KERNEL_OK")
</pallas_src>

<mosaic_0001>
module attributes {stable_mosaic.version = 11 : i64} {
  func.func @_bert_fused_kernel(%arg0: memref<16x1xi32, #tpu.memory_space<vmem>>, %arg1: memref<16x1xi32, #tpu.memory_space<vmem>>, %arg2: memref<2x8xi32, #tpu.memory_space<vmem>>, %arg3: memref<128x32xf32, #tpu.memory_space<vmem>>, %arg4: memref<8x32xf32, #tpu.memory_space<vmem>>, %arg5: memref<2x32x256xf32, #tpu.memory_space<vmem>>, %arg6: memref<2x8x96xf32, #tpu.memory_space<vmem>>, %arg7: memref<2x128xf32, #tpu.memory_space<vmem>>) attributes {dimension_semantics = [], scalar_prefetch = 0 : i64, scratch_operands = 0 : i64, tpu.core_type = #tpu.core_type<tc>} {
    %c0 = arith.constant 0 : index
    %c0_0 = arith.constant 0 : index
    %0 = vector.load %arg3[%c0, %c0_0] : memref<128x32xf32, #tpu.memory_space<vmem>>, vector<128x32xf32>
    %c0_1 = arith.constant 0 : index
    %c0_2 = arith.constant 0 : index
    %1 = vector.load %arg0[%c0_1, %c0_2] : memref<16x1xi32, #tpu.memory_space<vmem>>, vector<16x1xi32>
    %2 = tpu.iota {dimensions = array<i32: 1>} : vector<16x128xi32>
    %3 = vector.broadcast %1 : vector<16x1xi32> to vector<16x128xi32>
    %4 = arith.cmpi eq, %2, %3 : vector<16x128xi32>
    %5 = arith.extui %4 : vector<16x128xi1> to vector<16x128xi32>
    %6 = arith.sitofp %5 : vector<16x128xi32> to vector<16x128xf32>
    %cst = arith.constant dense<0.000000e+00> : vector<16x32xf32>
    %7 = tpu.matmul %6, %0, %cst {dimension_numbers = #tpu.dot_dimension_numbers<[1], [0], [0], [1], [0, 0, 1, 1], [], []>} : vector<16x128xf32>, vector<128x32xf32>, vector<16x32xf32> -> vector<16x32xf32>
    %8 = vector.extract_strided_slice %0 {offsets = [104, 0], sizes = [8, 32], strides = [1, 1]} : vector<128x32xf32> to vector<8x32xf32>
    %9 = tpu.concatenate %8, %8 in 0 : vector<8x32xf32>, vector<8x32xf32> -> vector<16x32xf32>
    %c0_3 = arith.constant 0 : index
    %c0_4 = arith.constant 0 : index
    %10 = vector.load %arg1[%c0_3, %c0_4] : memref<16x1xi32, #tpu.memory_space<vmem>>, vector<16x1xi32>
    %c1_i32 = arith.constant 1 : i32
    %11 = vector.broadcast %c1_i32 : i32 to vector<16x1xi32>
    %12 = arith.cmpi eq, %10, %11 : vector<16x1xi32>
    %13 = vector.extract_strided_slice %0 {offsets = [121, 0], sizes = [1, 32], strides = [1, 1]} : vector<128x32xf32> to vector<1x32xf32>
    %14 = vector.extract_strided_slice %0 {offsets = [120, 0], sizes = [1, 32], strides = [1, 1]} : vector<128x32xf32> to vector<1x32xf32>
    %15 = vector.shape_cast %12 : vector<16x1xi1> to vector<16x1xi1>
    %16 = vector.broadcast %15 : vector<16x1xi1> to vector<16x32xi1>
    %17 = vector.shape_cast %13 : vector<1x32xf32> to vector<1x32xf32>
    %18 = vector.broadcast %17 : vector<1x32xf32> to vector<16x32xf32>
    %19 = vector.shape_cast %14 : vector<1x32xf32> to vector<1x32xf32>
    %20 = vector.broadcast %19 : vector<1x32xf32> to vector<16x32xf32>
    %21 = arith.select %16, %18, %20 : vector<16x32xi1>, vector<16x32xf32>
    %22 = arith.addf %7, %9 : vector<16x32xf32>
    %23 = arith.addf %22, %21 : vector<16x32xf32>
    %c0_5 = arith.constant 0 : index
    %c0_6 = arith.constant 0 : index
    %24 = vector.load %arg4[%c0_5, %c0_6] : memref<8x32xf32, #tpu.memory_space<vmem>>, vector<1x32xf32>
    %c1 = arith.constant 1 : index
    %c0_7 = arith.constant 0 : index
    %25 = vector.load %arg4[%c1, %c0_7] : memref<8x32xf32, #tpu.memory_space<vmem>>, vector<1x32xf32>
    %cst_8 = arith.constant dense<0.000000e+00> : vector<16xf32>
    %26 = vector.multi_reduction <add>, %23, %cst_8 [1] : vector<16x32xf32> to vector<16xf32>
    %27 = vector.shape_cast %26 : vector<16xf32> to vector<16x1xf32>
    %cst_9 = arith.constant 3.200000e+01 : f32
    %28 = vector.broadcast %cst_9 : f32 to vector<16x1xf32>
    %29 = arith.divf %27, %28 : vector<16x1xf32>
    %30 = vector.broadcast %29 : vector<16x1xf32> to vector<16x32xf32>
    %31 = arith.subf %23, %30 : vector<16x32xf32>
    %32 = arith.mulf %31, %31 : vector<16x32xf32>
    %cst_10 = arith.constant dense<0.000000e+00> : vector<16xf32>
    %33 = vector.multi_reduction <add>, %32, %cst_10 [1] : vector<16x32xf32> to vector<16xf32>
    %34 = vector.shape_cast %33 : vector<16xf32> to vector<16x1xf32>
    %cst_11 = arith.constant 3.200000e+01 : f32
    %35 = vector.broadcast %cst_11 : f32 to vector<16x1xf32>
    %36 = arith.divf %34, %35 : vector<16x1xf32>
    %37 = vector.broadcast %29 : vector<16x1xf32> to vector<16x32xf32>
    %38 = arith.subf %23, %37 : vector<16x32xf32>
    %cst_12 = arith.constant 9.99999996E-13 : f32
    %39 = vector.broadcast %cst_12 : f32 to vector<16x1xf32>
    %40 = arith.addf %36, %39 : vector<16x1xf32>
    %41 = math.rsqrt %40 : vector<16x1xf32>
    %42 = vector.broadcast %41 : vector<16x1xf32> to vector<16x32xf32>
    %43 = arith.mulf %38, %42 : vector<16x32xf32>
    %44 = vector.broadcast %24 : vector<1x32xf32> to vector<16x32xf32>
    %45 = arith.mulf %43, %44 : vector<16x32xf32>
    %46 = vector.broadcast %25 : vector<1x32xf32> to vector<16x32xf32>
    %47 = arith.addf %45, %46 : vector<16x32xf32>
    %c0_13 = arith.constant 0 : index
    %c0_14 = arith.constant 0 : index
    %48 = vector.load %arg2[%c0_13, %c0_14] : memref<2x8xi32, #tpu.memory_space<vmem>>, vector<2x8xi32>
    %49 = arith.sitofp %48 : vector<2x8xi32> to vector<2x8xf32>
    %cst_15 = arith.constant 1.000000e+00 : f32
    %50 = vector.broadcast %cst_15 : f32 to vector<2x8xf32>
    %51 = arith.subf %50, %49 : vector<2x8xf32>
    %cst_16 = arith.constant -1.000000e+04 : f32
    %52 = vector.broadcast %cst_16 : f32 to vector<2x8xf32>
    %53 = arith.mulf %51, %52 : vector<2x8xf32>
    %54 = vector.shape_cast %53 : vector<2x8xf32> to vector<2x1x8xf32>
    %55 = tpu.concatenate %54, %54, %54, %54 in 0 : vector<2x1x8xf32>, vector<2x1x8xf32>, vector<2x1x8xf32>, vector<2x1x8xf32> -> vector<8x1x8xf32>
    %c0_17 = arith.constant 0 : index
    %c0_18 = arith.constant 0 : index
    %c0_19 = arith.constant 0 : index
    %56 = vector.load %arg5[%c0_17, %c0_18, %c0_19] : memref<2x32x256xf32, #tpu.memory_space<vmem>>, vector<1x32x256xf32>
    %57 = vector.shape_cast %56 : vector<1x32x256xf32> to vector<32x256xf32>
    %c0_20 = arith.constant 0 : index
    %c0_21 = arith.constant 0 : index
    %c0_22 = arith.constant 0 : index
    %58 = vector.load %arg6[%c0_20, %c0_21, %c0_22] : memref<2x8x96xf32, #tpu.memory_space<vmem>>, vector<1x8x96xf32>
    %59 = vector.shape_cast %58 : vector<1x8x96xf32> to vector<8x96xf32>
    %60 = vector.extract_strided_slice %57 {offsets = [0, 0], sizes = [32, 96], strides = [1, 1]} : vector<32x256xf32> to vector<32x96xf32>
    %cst_23 = arith.constant dense<0.000000e+00> : vector<16x96xf32>
    %61 = tpu.matmul %47, %60, %cst_23 {dimension_numbers = #tpu.dot_dimension_numbers<[1], [0], [0], [1], [0, 0, 1, 1], [], []>} : vector<16x32xf32>, vector<32x96xf32>, vector<16x96xf32> -> vector<16x96xf32>
    %62 = vector.extract_strided_slice %59 {offsets = [0, 0], sizes = [1, 96], strides = [1, 1]} : vector<8x96xf32> to vector<1x96xf32>
    %63 = vector.broadcast %62 : vector<1x96xf32> to vector<16x96xf32>
    %64 = arith.addf %61, %63 : vector<16x96xf32>
    %65 = vector.shape_cast %64 : vector<16x96xf32> to vector<2x8x96xf32>
    %66 = vector.extract_strided_slice %65 {offsets = [0, 0, 0], sizes = [2, 8, 8], strides = [1, 1, 1]} : vector<2x8x96xf32> to vector<2x8x8xf32>
    %67 = vector.extract_strided_slice %65 {offsets = [0, 0, 8], sizes = [2, 8, 8], strides = [1, 1, 1]} : vector<2x8x96xf32> to vector<2x8x8xf32>
    %68 = vector.extract_strided_slice %65 {offsets = [0, 0, 16], sizes = [2, 8, 8], strides = [1, 1, 1]} : vector<2x8x96xf32> to vector<2x8x8xf32>
    %69 = vector.extract_strided_slice %65 {offsets = [0, 0, 24], sizes = [2, 8, 8], strides = [1, 1, 1]} : vector<2x8x96xf32> to vector<2x8x8xf32>
    %70 = tpu.concatenate %66, %67, %68, %69 in 0 : vector<2x8x8xf32>, vector<2x8x8xf32>, vector<2x8x8xf32>, vector<2x8x8xf32> -> vector<8x8x8xf32>
    %71 = vector.extract_strided_slice %65 {offsets = [0, 0, 32], sizes = [2, 8, 8], strides = [1, 1, 1]} : vector<2x8x96xf32> to vector<2x8x8xf32>
    %72 = vector.extract_strided_slice %65 {offsets = [0, 0, 40], sizes = [2, 8, 8], strides = [1, 1, 1]} : vector<2x8x96xf32> to vector<2x8x8xf32>
    %73 = vector.extract_strided_slice %65 {offsets = [0, 0, 48], sizes = [2, 8, 8], strides = [1, 1, 1]} : vector<2x8x96xf32> to vector<2x8x8xf32>
    %74 = vector.extract_strided_slice %65 {offsets = [0, 0, 56], sizes = [2, 8, 8], strides = [1, 1, 1]} : vector<2x8x96xf32> to vector<2x8x8xf32>
    %75 = tpu.concatenate %71, %72, %73, %74 in 0 : vector<2x8x8xf32>, vector<2x8x8xf32>, vector<2x8x8xf32>, vector<2x8x8xf32> -> vector<8x8x8xf32>
    %76 = vector.extract_strided_slice %65 {offsets = [0, 0, 64], sizes = [2, 8, 8], strides = [1, 1, 1]} : vector<2x8x96xf32> to vector<2x8x8xf32>
    %77 = vector.extract_strided_slice %65 {offsets = [0, 0, 72], sizes = [2, 8, 8], strides = [1, 1, 1]} : vector<2x8x96xf32> to vector<2x8x8xf32>
    %78 = vector.extract_strided_slice %65 {offsets = [0, 0, 80], sizes = [2, 8, 8], strides = [1, 1, 1]} : vector<2x8x96xf32> to vector<2x8x8xf32>
    %79 = vector.extract_strided_slice %65 {offsets = [0, 0, 88], sizes = [2, 8, 8], strides = [1, 1, 1]} : vector<2x8x96xf32> to vector<2x8x8xf32>
    %80 = tpu.concatenate %76, %77, %78, %79 in 0 : vector<2x8x8xf32>, vector<2x8x8xf32>, vector<2x8x8xf32>, vector<2x8x8xf32> -> vector<8x8x8xf32>
    "tpu.trace_start"() <{level = 10 : i32, message = "bqd,bkd->bqk"}> : () -> ()
    %cst_24 = arith.constant dense<0.000000e+00> : vector<8x8x8xf32>
    %81 = tpu.matmul %70, %75, %cst_24 {dimension_numbers = #tpu.dot_dimension_numbers<[2], [2], [1], [1], [0, 0, 0, 1, 1, 1], [0], [0]>} : vector<8x8x8xf32>, vector<8x8x8xf32>, vector<8x8x8xf32> -> vector<8x8x8xf32>
    "tpu.trace_stop"() : () -> ()
    %82 = vector.broadcast %55 : vector<8x1x8xf32> to vector<8x8x8xf32>
    %83 = arith.addf %81, %82 : vector<8x8x8xf32>
    %84 = math.exp %83 : vector<8x8x8xf32>
    %cst_25 = arith.constant dense<0.000000e+00> : vector<8x8xf32>
    %85 = vector.multi_reduction <add>, %84, %cst_25 [2] : vector<8x8x8xf32> to vector<8x8xf32>
    %86 = vector.shape_cast %85 : vector<8x8xf32> to vector<8x8x1xf32>
    %87 = tpu.reciprocal %86 {approx = true} : vector<8x8x1xf32> -> vector<8x8x1xf32>
    %88 = vector.broadcast %87 : vector<8x8x1xf32> to vector<8x8x8xf32>
    %89 = arith.mulf %84, %88 : vector<8x8x8xf32>
    "tpu.trace_start"() <{level = 10 : i32, message = "bqk,bkd->bqd"}> : () -> ()
    %cst_26 = arith.constant dense<0.000000e+00> : vector<8x8x8xf32>
    %90 = tpu.matmul %89, %80, %cst_26 {dimension_numbers = #tpu.dot_dimension_numbers<[2], [1], [1], [2], [0, 0, 0, 1, 1, 2], [0], [0]>} : vector<8x8x8xf32>, vector<8x8x8xf32>, vector<8x8x8xf32> -> vector<8x8x8xf32>
    "tpu.trace_stop"() : () -> ()
    %91 = vector.extract_strided_slice %90 {offsets = [0, 0, 0], sizes = [2, 8, 8], strides = [1, 1, 1]} : vector<8x8x8xf32> to vector<2x8x8xf32>
    %92 = vector.extract_strided_slice %90 {offsets = [2, 0, 0], sizes = [2, 8, 8], strides = [1, 1, 1]} : vector<8x8x8xf32> to vector<2x8x8xf32>
    %93 = vector.extract_strided_slice %90 {offsets = [4, 0, 0], sizes = [2, 8, 8], strides = [1, 1, 1]} : vector<8x8x8xf32> to vector<2x8x8xf32>
    %94 = vector.extract_strided_slice %90 {offsets = [6, 0, 0], sizes = [2, 8, 8], strides = [1, 1, 1]} : vector<8x8x8xf32> to vector<2x8x8xf32>
    %95 = tpu.concatenate %91, %92, %93, %94 in 2 : vector<2x8x8xf32>, vector<2x8x8xf32>, vector<2x8x8xf32>, vector<2x8x8xf32> -> vector<2x8x32xf32>
    %96 = vector.shape_cast %95 : vector<2x8x32xf32> to vector<16x32xf32>
    %97 = vector.extract_strided_slice %57 {offsets = [0, 96], sizes = [32, 32], strides = [1, 1]} : vector<32x256xf32> to vector<32x32xf32>
    %cst_27 = arith.constant dense<0.000000e+00> : vector<16x32xf32>
    %98 = tpu.matmul %96, %97, %cst_27 {dimension_numbers = #tpu.dot_dimension_numbers<[1], [0], [0], [1], [0, 0, 1, 1], [], []>} : vector<16x32xf32>, vector<32x32xf32>, vector<16x32xf32> -> vector<16x32xf32>
    %99 = vector.extract_strided_slice %59 {offsets = [1, 0], sizes = [1, 32], strides = [1, 1]} : vector<8x96xf32> to vector<1x32xf32>
    %100 = vector.broadcast %99 : vector<1x32xf32> to vector<16x32xf32>
    %101 = arith.addf %98, %100 : vector<16x32xf32>
    %102 = arith.addf %101, %47 : vector<16x32xf32>
    %103 = vector.extract_strided_slice %59 {offsets = [2, 0], sizes = [1, 32], strides = [1, 1]} : vector<8x96xf32> to vector<1x32xf32>
    %104 = vector.extract_strided_slice %59 {offsets = [3, 0], sizes = [1, 32], strides = [1, 1]} : vector<8x96xf32> to vector<1x32xf32>
    %cst_28 = arith.constant dense<0.000000e+00> : vector<16xf32>
    %105 = vector.multi_reduction <add>, %102, %cst_28 [1] : vector<16x32xf32> to vector<16xf32>
    %106 = vector.shape_cast %105 : vector<16xf32> to vector<16x1xf32>
    %cst_29 = arith.constant 3.200000e+01 : f32
    %107 = vector.broadcast %cst_29 : f32 to vector<16x1xf32>
    %108 = arith.divf %106, %107 : vector<16x1xf32>
    %109 = vector.broadcast %108 : vector<16x1xf32> to vector<16x32xf32>
    %110 = arith.subf %102, %109 : vector<16x32xf32>
    %111 = arith.mulf %110, %110 : vector<16x32xf32>
    %cst_30 = arith.constant dense<0.000000e+00> : vector<16xf32>
    %112 = vector.multi_reduction <add>, %111, %cst_30 [1] : vector<16x32xf32> to vector<16xf32>
    %113 = vector.shape_cast %112 : vector<16xf32> to vector<16x1xf32>
    %cst_31 = arith.constant 3.200000e+01 : f32
    %114 = vector.broadcast %cst_31 : f32 to vector<16x1xf32>
    %115 = arith.divf %113, %114 : vector<16x1xf32>
    %116 = vector.broadcast %108 : vector<16x1xf32> to vector<16x32xf32>
    %117 = arith.subf %102, %116 : vector<16x32xf32>
    %cst_32 = arith.constant 9.99999996E-13 : f32
    %118 = vector.broadcast %cst_32 : f32 to vector<16x1xf32>
    %119 = arith.addf %115, %118 : vector<16x1xf32>
    %120 = math.rsqrt %119 : vector<16x1xf32>
    %121 = vector.broadcast %120 : vector<16x1xf32> to vector<16x32xf32>
    %122 = arith.mulf %117, %121 : vector<16x32xf32>
    %123 = vector.broadcast %103 : vector<1x32xf32> to vector<16x32xf32>
    %124 = arith.mulf %122, %123 : vector<16x32xf32>
    %125 = vector.broadcast %104 : vector<1x32xf32> to vector<16x32xf32>
    %126 = arith.addf %124, %125 : vector<16x32xf32>
    %127 = vector.extract_strided_slice %57 {offsets = [0, 128], sizes = [32, 64], strides = [1, 1]} : vector<32x256xf32> to vector<32x64xf32>
    %cst_33 = arith.constant dense<0.000000e+00> : vector<16x64xf32>
    %128 = tpu.matmul %126, %127, %cst_33 {dimension_numbers = #tpu.dot_dimension_numbers<[1], [0], [0], [1], [0, 0, 1, 1], [], []>} : vector<16x32xf32>, vector<32x64xf32>, vector<16x64xf32> -> vector<16x64xf32>
    %129 = vector.extract_strided_slice %59 {offsets = [4, 0], sizes = [1, 64], strides = [1, 1]} : vector<8x96xf32> to vector<1x64xf32>
    %130 = vector.broadcast %129 : vector<1x64xf32> to vector<16x64xf32>
    %131 = arith.addf %128, %130 : vector<16x64xf32>
    %cst_34 = arith.constant 5.000000e-01 : f32
    %132 = vector.broadcast %cst_34 : f32 to vector<16x64xf32>
    %133 = arith.mulf %132, %131 : vector<16x64xf32>
    %cst_35 = arith.constant 4.471500e-02 : f32
    %134 = vector.broadcast %cst_35 : f32 to vector<16x64xf32>
    %135 = arith.mulf %134, %131 : vector<16x64xf32>
    %136 = arith.mulf %135, %131 : vector<16x64xf32>
    %137 = arith.mulf %136, %131 : vector<16x64xf32>
    %138 = arith.addf %131, %137 : vector<16x64xf32>
    %cst_36 = arith.constant 0.797884583 : f32
    %139 = vector.broadcast %cst_36 : f32 to vector<16x64xf32>
    %140 = arith.mulf %139, %138 : vector<16x64xf32>
    %141 = math.tanh %140 : vector<16x64xf32>
    %cst_37 = arith.constant 1.000000e+00 : f32
    %142 = vector.broadcast %cst_37 : f32 to vector<16x64xf32>
    %143 = arith.addf %142, %141 : vector<16x64xf32>
    %144 = arith.mulf %133, %143 : vector<16x64xf32>
    %145 = vector.extract_strided_slice %57 {offsets = [0, 192], sizes = [32, 64], strides = [1, 1]} : vector<32x256xf32> to vector<32x64xf32>
    %cst_38 = arith.constant dense<0.000000e+00> : vector<16x32xf32>
    %146 = tpu.matmul %144, %145, %cst_38 {dimension_numbers = #tpu.dot_dimension_numbers<[1], [1], [0], [0], [0, 0, 1, 0], [], []>} : vector<16x64xf32>, vector<32x64xf32>, vector<16x32xf32> -> vector<16x32xf32>
    %147 = vector.extract_strided_slice %59 {offsets = [5, 0], sizes = [1, 32], strides = [1, 1]} : vector<8x96xf32> to vector<1x32xf32>
    %148 = vector.broadcast %147 : vector<1x32xf32> to vector<16x32xf32>
    %149 = arith.addf %146, %148 : vector<16x32xf32>
    %150 = arith.addf %149, %126 : vector<16x32xf32>
    %151 = vector.extract_strided_slice %59 {offsets = [6, 0], sizes = [1, 32], strides = [1, 1]} : vector<8x96xf32> to vector<1x32xf32>
    %152 = vector.extract_strided_slice %59 {offsets = [7, 0], sizes = [1, 32], strides = [1, 1]} : vector<8x96xf32> to vector<1x32xf32>
    %cst_39 = arith.constant dense<0.000000e+00> : vector<16xf32>
    %153 = vector.multi_reduction <add>, %150, %cst_39 [1] : vector<16x32xf32> to vector<16xf32>
    %154 = vector.shape_cast %153 : vector<16xf32> to vector<16x1xf32>
    %cst_40 = arith.constant 3.200000e+01 : f32
    %155 = vector.broadcast %cst_40 : f32 to vector<16x1xf32>
    %156 = arith.divf %154, %155 : vector<16x1xf32>
    %157 = vector.broadcast %156 : vector<16x1xf32> to vector<16x32xf32>
    %158 = arith.subf %150, %157 : vector<16x32xf32>
    %159 = arith.mulf %158, %158 : vector<16x32xf32>
    %cst_41 = arith.constant dense<0.000000e+00> : vector<16xf32>
    %160 = vector.multi_reduction <add>, %159, %cst_41 [1] : vector<16x32xf32> to vector<16xf32>
    %161 = vector.shape_cast %160 : vector<16xf32> to vector<16x1xf32>
    %cst_42 = arith.constant 3.200000e+01 : f32
    %162 = vector.broadcast %cst_42 : f32 to vector<16x1xf32>
    %163 = arith.divf %161, %162 : vector<16x1xf32>
    %164 = vector.broadcast %156 : vector<16x1xf32> to vector<16x32xf32>
    %165 = arith.subf %150, %164 : vector<16x32xf32>
    %cst_43 = arith.constant 9.99999996E-13 : f32
    %166 = vector.broadcast %cst_43 : f32 to vector<16x1xf32>
    %167 = arith.addf %163, %166 : vector<16x1xf32>
    %168 = math.rsqrt %167 : vector<16x1xf32>
    %169 = vector.broadcast %168 : vector<16x1xf32> to vector<16x32xf32>
    %170 = arith.mulf %165, %169 : vector<16x32xf32>
    %171 = vector.broadcast %151 : vector<1x32xf32> to vector<16x32xf32>
    %172 = arith.mulf %170, %171 : vector<16x32xf32>
    %173 = vector.broadcast %152 : vector<1x32xf32> to vector<16x32xf32>
    %174 = arith.addf %172, %173 : vector<16x32xf32>
    %c1_44 = arith.constant 1 : index
    %c0_45 = arith.constant 0 : index
    %c0_46 = arith.constant 0 : index
    %175 = vector.load %arg5[%c1_44, %c0_45, %c0_46] : memref<2x32x256xf32, #tpu.memory_space<vmem>>, vector<1x32x256xf32>
    %176 = vector.shape_cast %175 : vector<1x32x256xf32> to vector<32x256xf32>
    %c1_47 = arith.constant 1 : index
    %c0_48 = arith.constant 0 : index
    %c0_49 = arith.constant 0 : index
    %177 = vector.load %arg6[%c1_47, %c0_48, %c0_49] : memref<2x8x96xf32, #tpu.memory_space<vmem>>, vector<1x8x96xf32>
    %178 = vector.shape_cast %177 : vector<1x8x96xf32> to vector<8x96xf32>
    %179 = vector.extract_strided_slice %176 {offsets = [0, 0], sizes = [32, 96], strides = [1, 1]} : vector<32x256xf32> to vector<32x96xf32>
    %cst_50 = arith.constant dense<0.000000e+00> : vector<16x96xf32>
    %180 = tpu.matmul %174, %179, %cst_50 {dimension_numbers = #tpu.dot_dimension_numbers<[1], [0], [0], [1], [0, 0, 1, 1], [], []>} : vector<16x32xf32>, vector<32x96xf32>, vector<16x96xf32> -> vector<16x96xf32>
    %181 = vector.extract_strided_slice %178 {offsets = [0, 0], sizes = [1, 96], strides = [1, 1]} : vector<8x96xf32> to vector<1x96xf32>
    %182 = vector.broadcast %181 : vector<1x96xf32> to vector<16x96xf32>
    %183 = arith.addf %180, %182 : vector<16x96xf32>
    %184 = vector.shape_cast %183 : vector<16x96xf32> to vector<2x8x96xf32>
    %185 = vector.extract_strided_slice %184 {offsets = [0, 0, 0], sizes = [2, 8, 8], strides = [1, 1, 1]} : vector<2x8x96xf32> to vector<2x8x8xf32>
    %186 = vector.extract_strided_slice %184 {offsets = [0, 0, 8], sizes = [2, 8, 8], strides = [1, 1, 1]} : vector<2x8x96xf32> to vector<2x8x8xf32>
    %187 = vector.extract_strided_slice %184 {offsets = [0, 0, 16], sizes = [2, 8, 8], strides = [1, 1, 1]} : vector<2x8x96xf32> to vector<2x8x8xf32>
    %188 = vector.extract_strided_slice %184 {offsets = [0, 0, 24], sizes = [2, 8, 8], strides = [1, 1, 1]} : vector<2x8x96xf32> to vector<2x8x8xf32>
    %189 = tpu.concatenate %185, %186, %187, %188 in 0 : vector<2x8x8xf32>, vector<2x8x8xf32>, vector<2x8x8xf32>, vector<2x8x8xf32> -> vector<8x8x8xf32>
    %190 = vector.extract_strided_slice %184 {offsets = [0, 0, 32], sizes = [2, 8, 8], strides = [1, 1, 1]} : vector<2x8x96xf32> to vector<2x8x8xf32>
    %191 = vector.extract_strided_slice %184 {offsets = [0, 0, 40], sizes = [2, 8, 8], strides = [1, 1, 1]} : vector<2x8x96xf32> to vector<2x8x8xf32>
    %192 = vector.extract_strided_slice %184 {offsets = [0, 0, 48], sizes = [2, 8, 8], strides = [1, 1, 1]} : vector<2x8x96xf32> to vector<2x8x8xf32>
    %193 = vector.extract_strided_slice %184 {offsets = [0, 0, 56], sizes = [2, 8, 8], strides = [1, 1, 1]} : vector<2x8x96xf32> to vector<2x8x8xf32>
    %194 = tpu.concatenate %190, %191, %192, %193 in 0 : vector<2x8x8xf32>, vector<2x8x8xf32>, vector<2x8x8xf32>, vector<2x8x8xf32> -> vector<8x8x8xf32>
    %195 = vector.extract_strided_slice %184 {offsets = [0, 0, 64], sizes = [2, 8, 8], strides = [1, 1, 1]} : vector<2x8x96xf32> to vector<2x8x8xf32>
    %196 = vector.extract_strided_slice %184 {offsets = [0, 0, 72], sizes = [2, 8, 8], strides = [1, 1, 1]} : vector<2x8x96xf32> to vector<2x8x8xf32>
    %197 = vector.extract_strided_slice %184 {offsets = [0, 0, 80], sizes = [2, 8, 8], strides = [1, 1, 1]} : vector<2x8x96xf32> to vector<2x8x8xf32>
    %198 = vector.extract_strided_slice %184 {offsets = [0, 0, 88], sizes = [2, 8, 8], strides = [1, 1, 1]} : vector<2x8x96xf32> to vector<2x8x8xf32>
    %199 = tpu.concatenate %195, %196, %197, %198 in 0 : vector<2x8x8xf32>, vector<2x8x8xf32>, vector<2x8x8xf32>, vector<2x8x8xf32> -> vector<8x8x8xf32>
    "tpu.trace_start"() <{level = 10 : i32, message = "bqd,bkd->bqk"}> : () -> ()
    %cst_51 = arith.constant dense<0.000000e+00> : vector<8x8x8xf32>
    %200 = tpu.matmul %189, %194, %cst_51 {dimension_numbers = #tpu.dot_dimension_numbers<[2], [2], [1], [1], [0, 0, 0, 1, 1, 1], [0], [0]>} : vector<8x8x8xf32>, vector<8x8x8xf32>, vector<8x8x8xf32> -> vector<8x8x8xf32>
    "tpu.trace_stop"() : () -> ()
    %201 = vector.broadcast %55 : vector<8x1x8xf32> to vector<8x8x8xf32>
    %202 = arith.addf %200, %201 : vector<8x8x8xf32>
    %203 = math.exp %202 : vector<8x8x8xf32>
    %cst_52 = arith.constant dense<0.000000e+00> : vector<8x8xf32>
    %204 = vector.multi_reduction <add>, %203, %cst_52 [2] : vector<8x8x8xf32> to vector<8x8xf32>
    %205 = vector.shape_cast %204 : vector<8x8xf32> to vector<8x8x1xf32>
    %206 = tpu.reciprocal %205 {approx = true} : vector<8x8x1xf32> -> vector<8x8x1xf32>
    %207 = vector.broadcast %206 : vector<8x8x1xf32> to vector<8x8x8xf32>
    %208 = arith.mulf %203, %207 : vector<8x8x8xf32>
    "tpu.trace_start"() <{level = 10 : i32, message = "bqk,bkd->bqd"}> : () -> ()
    %cst_53 = arith.constant dense<0.000000e+00> : vector<8x8x8xf32>
    %209 = tpu.matmul %208, %199, %cst_53 {dimension_numbers = #tpu.dot_dimension_numbers<[2], [1], [1], [2], [0, 0, 0, 1, 1, 2], [0], [0]>} : vector<8x8x8xf32>, vector<8x8x8xf32>, vector<8x8x8xf32> -> vector<8x8x8xf32>
    "tpu.trace_stop"() : () -> ()
    %210 = vector.extract_strided_slice %209 {offsets = [0, 0, 0], sizes = [2, 8, 8], strides = [1, 1, 1]} : vector<8x8x8xf32> to vector<2x8x8xf32>
    %211 = vector.extract_strided_slice %209 {offsets = [2, 0, 0], sizes = [2, 8, 8], strides = [1, 1, 1]} : vector<8x8x8xf32> to vector<2x8x8xf32>
    %212 = vector.extract_strided_slice %209 {offsets = [4, 0, 0], sizes = [2, 8, 8], strides = [1, 1, 1]} : vector<8x8x8xf32> to vector<2x8x8xf32>
    %213 = vector.extract_strided_slice %209 {offsets = [6, 0, 0], sizes = [2, 8, 8], strides = [1, 1, 1]} : vector<8x8x8xf32> to vector<2x8x8xf32>
    %214 = tpu.concatenate %210, %211, %212, %213 in 2 : vector<2x8x8xf32>, vector<2x8x8xf32>, vector<2x8x8xf32>, vector<2x8x8xf32> -> vector<2x8x32xf32>
    %215 = vector.shape_cast %214 : vector<2x8x32xf32> to vector<16x32xf32>
    %216 = vector.extract_strided_slice %176 {offsets = [0, 96], sizes = [32, 32], strides = [1, 1]} : vector<32x256xf32> to vector<32x32xf32>
    %cst_54 = arith.constant dense<0.000000e+00> : vector<16x32xf32>
    %217 = tpu.matmul %215, %216, %cst_54 {dimension_numbers = #tpu.dot_dimension_numbers<[1], [0], [0], [1], [0, 0, 1, 1], [], []>} : vector<16x32xf32>, vector<32x32xf32>, vector<16x32xf32> -> vector<16x32xf32>
    %218 = vector.extract_strided_slice %178 {offsets = [1, 0], sizes = [1, 32], strides = [1, 1]} : vector<8x96xf32> to vector<1x32xf32>
    %219 = vector.broadcast %218 : vector<1x32xf32> to vector<16x32xf32>
    %220 = arith.addf %217, %219 : vector<16x32xf32>
    %221 = arith.addf %220, %174 : vector<16x32xf32>
    %222 = vector.extract_strided_slice %178 {offsets = [2, 0], sizes = [1, 32], strides = [1, 1]} : vector<8x96xf32> to vector<1x32xf32>
    %223 = vector.extract_strided_slice %178 {offsets = [3, 0], sizes = [1, 32], strides = [1, 1]} : vector<8x96xf32> to vector<1x32xf32>
    %cst_55 = arith.constant dense<0.000000e+00> : vector<16xf32>
    %224 = vector.multi_reduction <add>, %221, %cst_55 [1] : vector<16x32xf32> to vector<16xf32>
    %225 = vector.shape_cast %224 : vector<16xf32> to vector<16x1xf32>
    %cst_56 = arith.constant 3.200000e+01 : f32
    %226 = vector.broadcast %cst_56 : f32 to vector<16x1xf32>
    %227 = arith.divf %225, %226 : vector<16x1xf32>
    %228 = vector.broadcast %227 : vector<16x1xf32> to vector<16x32xf32>
    %229 = arith.subf %221, %228 : vector<16x32xf32>
    %230 = arith.mulf %229, %229 : vector<16x32xf32>
    %cst_57 = arith.constant dense<0.000000e+00> : vector<16xf32>
    %231 = vector.multi_reduction <add>, %230, %cst_57 [1] : vector<16x32xf32> to vector<16xf32>
    %232 = vector.shape_cast %231 : vector<16xf32> to vector<16x1xf32>
    %cst_58 = arith.constant 3.200000e+01 : f32
    %233 = vector.broadcast %cst_58 : f32 to vector<16x1xf32>
    %234 = arith.divf %232, %233 : vector<16x1xf32>
    %235 = vector.broadcast %227 : vector<16x1xf32> to vector<16x32xf32>
    %236 = arith.subf %221, %235 : vector<16x32xf32>
    %cst_59 = arith.constant 9.99999996E-13 : f32
    %237 = vector.broadcast %cst_59 : f32 to vector<16x1xf32>
    %238 = arith.addf %234, %237 : vector<16x1xf32>
    %239 = math.rsqrt %238 : vector<16x1xf32>
    %240 = vector.broadcast %239 : vector<16x1xf32> to vector<16x32xf32>
    %241 = arith.mulf %236, %240 : vector<16x32xf32>
    %242 = vector.broadcast %222 : vector<1x32xf32> to vector<16x32xf32>
    %243 = arith.mulf %241, %242 : vector<16x32xf32>
    %244 = vector.broadcast %223 : vector<1x32xf32> to vector<16x32xf32>
    %245 = arith.addf %243, %244 : vector<16x32xf32>
    %246 = vector.extract_strided_slice %176 {offsets = [0, 128], sizes = [32, 64], strides = [1, 1]} : vector<32x256xf32> to vector<32x64xf32>
    %cst_60 = arith.constant dense<0.000000e+00> : vector<16x64xf32>
    %247 = tpu.matmul %245, %246, %cst_60 {dimension_numbers = #tpu.dot_dimension_numbers<[1], [0], [0], [1], [0, 0, 1, 1], [], []>} : vector<16x32xf32>, vector<32x64xf32>, vector<16x64xf32> -> vector<16x64xf32>
    %248 = vector.extract_strided_slice %178 {offsets = [4, 0], sizes = [1, 64], strides = [1, 1]} : vector<8x96xf32> to vector<1x64xf32>
    %249 = vector.broadcast %248 : vector<1x64xf32> to vector<16x64xf32>
    %250 = arith.addf %247, %249 : vector<16x64xf32>
    %cst_61 = arith.constant 5.000000e-01 : f32
    %251 = vector.broadcast %cst_61 : f32 to vector<16x64xf32>
    %252 = arith.mulf %251, %250 : vector<16x64xf32>
    %cst_62 = arith.constant 4.471500e-02 : f32
    %253 = vector.broadcast %cst_62 : f32 to vector<16x64xf32>
    %254 = arith.mulf %253, %250 : vector<16x64xf32>
    %255 = arith.mulf %254, %250 : vector<16x64xf32>
    %256 = arith.mulf %255, %250 : vector<16x64xf32>
    %257 = arith.addf %250, %256 : vector<16x64xf32>
    %cst_63 = arith.constant 0.797884583 : f32
    %258 = vector.broadcast %cst_63 : f32 to vector<16x64xf32>
    %259 = arith.mulf %258, %257 : vector<16x64xf32>
    %260 = math.tanh %259 : vector<16x64xf32>
    %cst_64 = arith.constant 1.000000e+00 : f32
    %261 = vector.broadcast %cst_64 : f32 to vector<16x64xf32>
    %262 = arith.addf %261, %260 : vector<16x64xf32>
    %263 = arith.mulf %252, %262 : vector<16x64xf32>
    %264 = vector.extract_strided_slice %176 {offsets = [0, 192], sizes = [32, 64], strides = [1, 1]} : vector<32x256xf32> to vector<32x64xf32>
    %cst_65 = arith.constant dense<0.000000e+00> : vector<16x32xf32>
    %265 = tpu.matmul %263, %264, %cst_65 {dimension_numbers = #tpu.dot_dimension_numbers<[1], [1], [0], [0], [0, 0, 1, 0], [], []>} : vector<16x64xf32>, vector<32x64xf32>, vector<16x32xf32> -> vector<16x32xf32>
    %266 = vector.extract_strided_slice %178 {offsets = [5, 0], sizes = [1, 32], strides = [1, 1]} : vector<8x96xf32> to vector<1x32xf32>
    %267 = vector.broadcast %266 : vector<1x32xf32> to vector<16x32xf32>
    %268 = arith.addf %265, %267 : vector<16x32xf32>
    %269 = arith.addf %268, %245 : vector<16x32xf32>
    %270 = vector.extract_strided_slice %178 {offsets = [6, 0], sizes = [1, 32], strides = [1, 1]} : vector<8x96xf32> to vector<1x32xf32>
    %271 = vector.extract_strided_slice %178 {offsets = [7, 0], sizes = [1, 32], strides = [1, 1]} : vector<8x96xf32> to vector<1x32xf32>
    %cst_66 = arith.constant dense<0.000000e+00> : vector<16xf32>
    %272 = vector.multi_reduction <add>, %269, %cst_66 [1] : vector<16x32xf32> to vector<16xf32>
    %273 = vector.shape_cast %272 : vector<16xf32> to vector<16x1xf32>
    %cst_67 = arith.constant 3.200000e+01 : f32
    %274 = vector.broadcast %cst_67 : f32 to vector<16x1xf32>
    %275 = arith.divf %273, %274 : vector<16x1xf32>
    %276 = vector.broadcast %275 : vector<16x1xf32> to vector<16x32xf32>
    %277 = arith.subf %269, %276 : vector<16x32xf32>
    %278 = arith.mulf %277, %277 : vector<16x32xf32>
    %cst_68 = arith.constant dense<0.000000e+00> : vector<16xf32>
    %279 = vector.multi_reduction <add>, %278, %cst_68 [1] : vector<16x32xf32> to vector<16xf32>
    %280 = vector.shape_cast %279 : vector<16xf32> to vector<16x1xf32>
    %cst_69 = arith.constant 3.200000e+01 : f32
    %281 = vector.broadcast %cst_69 : f32 to vector<16x1xf32>
    %282 = arith.divf %280, %281 : vector<16x1xf32>
    %283 = vector.broadcast %275 : vector<16x1xf32> to vector<16x32xf32>
    %284 = arith.subf %269, %283 : vector<16x32xf32>
    %cst_70 = arith.constant 9.99999996E-13 : f32
    %285 = vector.broadcast %cst_70 : f32 to vector<16x1xf32>
    %286 = arith.addf %282, %285 : vector<16x1xf32>
    %287 = math.rsqrt %286 : vector<16x1xf32>
    %288 = vector.broadcast %287 : vector<16x1xf32> to vector<16x32xf32>
    %289 = arith.mulf %284, %288 : vector<16x32xf32>
    %290 = vector.broadcast %270 : vector<1x32xf32> to vector<16x32xf32>
    %291 = arith.mulf %289, %290 : vector<16x32xf32>
    %292 = vector.broadcast %271 : vector<1x32xf32> to vector<16x32xf32>
    %293 = arith.addf %291, %292 : vector<16x32xf32>
    %c2 = arith.constant 2 : index
    %c0_71 = arith.constant 0 : index
    %294 = vector.load %arg4[%c2, %c0_71] : memref<8x32xf32, #tpu.memory_space<vmem>>, vector<1x32xf32>
    %c3 = arith.constant 3 : index
    %c0_72 = arith.constant 0 : index
    %295 = vector.load %arg4[%c3, %c0_72] : memref<8x32xf32, #tpu.memory_space<vmem>>, vector<1x32xf32>
    %c4 = arith.constant 4 : index
    %c0_73 = arith.constant 0 : index
    %296 = vector.load %arg4[%c4, %c0_73] : memref<8x32xf32, #tpu.memory_space<vmem>>, vector<1x1xf32>
    %297 = vector.extract_strided_slice %293 {offsets = [0, 0], sizes = [8, 32], strides = [1, 1]} : vector<16x32xf32> to vector<8x32xf32>
    %cst_74 = arith.constant dense<0.000000e+00> : vector<32xf32>
    %298 = vector.multi_reduction <add>, %297, %cst_74 [0] : vector<8x32xf32> to vector<32xf32>
    %299 = vector.shape_cast %298 : vector<32xf32> to vector<1x32xf32>
    %cst_75 = arith.constant 8.000000e+00 : f32
    %300 = vector.broadcast %cst_75 : f32 to vector<1x32xf32>
    %301 = arith.divf %299, %300 : vector<1x32xf32>
    %cst_76 = arith.constant dense<0xFF800000> : vector<32xf32>
    %302 = vector.multi_reduction <maximumf>, %297, %cst_76 [0] : vector<8x32xf32> to vector<32xf32>
    %303 = vector.shape_cast %302 : vector<32xf32> to vector<1x32xf32>
    %304 = arith.mulf %301, %294 : vector<1x32xf32>
    %305 = arith.mulf %303, %295 : vector<1x32xf32>
    %306 = arith.addf %304, %305 : vector<1x32xf32>
    %cst_77 = arith.constant dense<0.000000e+00> : vector<1xf32>
    %307 = vector.multi_reduction <add>, %306, %cst_77 [1] : vector<1x32xf32> to vector<1xf32>
    %308 = vector.shape_cast %307 : vector<1xf32> to vector<1x1xf32>
    %309 = arith.addf %308, %296 : vector<1x1xf32>
    %310 = vector.extract_strided_slice %293 {offsets = [8, 0], sizes = [8, 32], strides = [1, 1]} : vector<16x32xf32> to vector<8x32xf32>
    %cst_78 = arith.constant dense<0.000000e+00> : vector<32xf32>
    %311 = vector.multi_reduction <add>, %310, %cst_78 [0] : vector<8x32xf32> to vector<32xf32>
    %312 = vector.shape_cast %311 : vector<32xf32> to vector<1x32xf32>
    %cst_79 = arith.constant 8.000000e+00 : f32
    %313 = vector.broadcast %cst_79 : f32 to vector<1x32xf32>
    %314 = arith.divf %312, %313 : vector<1x32xf32>
    %cst_80 = arith.constant dense<0xFF800000> : vector<32xf32>
    %315 = vector.multi_reduction <maximumf>, %310, %cst_80 [0] : vector<8x32xf32> to vector<32xf32>
    %316 = vector.shape_cast %315 : vector<32xf32> to vector<1x32xf32>
    %317 = arith.mulf %314, %294 : vector<1x32xf32>
    %318 = arith.mulf %316, %295 : vector<1x32xf32>
    %319 = arith.addf %317, %318 : vector<1x32xf32>
    %cst_81 = arith.constant dense<0.000000e+00> : vector<1xf32>
    %320 = vector.multi_reduction <add>, %319, %cst_81 [1] : vector<1x32xf32> to vector<1xf32>
    %321 = vector.shape_cast %320 : vector<1xf32> to vector<1x1xf32>
    %322 = arith.addf %321, %296 : vector<1x1xf32>
    %323 = tpu.concatenate %309, %322 in 0 : vector<1x1xf32>, vector<1x1xf32> -> vector<2x1xf32>
    %324 = vector.shape_cast %323 : vector<2x1xf32> to vector<2x1xf32>
    %325 = vector.broadcast %324 : vector<2x1xf32> to vector<2x128xf32>
    %c0_82 = arith.constant 0 : index
    %c0_83 = arith.constant 0 : index
    %326 = vector.load %arg7[%c0_82, %c0_83] : memref<2x128xf32, #tpu.memory_space<vmem>>, vector<2x128xf32>
    tpu.vector_store %arg7[%c0_82, %c0_83], %325 {strides = array<i32>} : memref<2x128xf32, #tpu.memory_space<vmem>>, vector<2x128xf32>,
    return
  }
}

</mosaic_0001>

<bundles_post_ra>
// kernel: bert_fn_forward.1
= control target key start
LH: loop header
LB: loop body
LE: loop exit
PB: predicated region body
PF: predicated region fallthrough
CT: control target
= control target key end

     0   :  { %v2101_v0 = vmov 0   ;;  %v44_v23 = vlaneseq  ;;  %v2102_v26 = vmov 1.0   ;;  %vm103_vm5 = vcmask 261120   ;;  %s2104_s28 = smov 120   ;;  %s2105_s29 = smov 104   ;;  %s2671_s0 = inlined_call_operand.vmem [shape: s32[16,1], index: 0, kind: input, shape index: {}]   ;;  %s2672_s3 = inlined_call_operand.vmem [shape: f32[128,32], index: 3, kind: input, shape index: {}]   ;;  %s2673_s1 = inlined_call_operand.vmem [shape: s32[16,1], index: 1, kind: input, shape index: {}]   ;;  %s2674_s4 = inlined_call_operand.vmem [shape: f32[8,32], index: 4, kind: input, shape index: {}]   ;;  %s2675_s5 = inlined_call_operand.vmem [shape: f32[2,32,256], index: 5, kind: input, shape index: {}]   ;;  %s2676_s6 = inlined_call_operand.vmem [shape: f32[2,8,96], index: 6, kind: input, shape index: {}]   ;;  %s2677_s2 = inlined_call_operand.vmem [shape: s32[2,8], index: 2, kind: input, shape index: {}]   ;;  %s2678_s7 = inlined_call_operand.vmem [shape: f32[2,128], index: 7, kind: output, shape index: {}]  }
   0x1   :  { %1951 = vset.pattern.permute.xlu0 %v2101_v0  ;;  %v42_v1 = vld [vmem:[%s2671_s0] sm:$0xff]  ;;  %v2160_v2 = vld [vmem:[%s2672_s3 + $0x78] sm:$0xff]  ;;  %1952 = vset.pattern.permute.xlu1 %v2101_v0  ;;  %v40_v3 = vld [vmem:[%s2672_s3 + $0x70] sm:$0xff]  ;;  %v2103_v42 = vmov 32.0   ;;  %s2106_s30 = smov 112   ;;  %s2107_s8 = smov 96  }
   0x2   :  { %47 = vperm.xlu0 %1951, %v42_v1   ;;  %76 = vmatpush.msra.mxu0 %v2160_v2  ;;  %v2169_v4 = vld [vmem:[%s2672_s3 + $0x68] sm:$0xff]  ;;  %v38_v5 = vld [vmem:[%s2672_s3 + $0x60] sm:$0xff]  ;;  %v37_v7 = vld [vmem:[%s2672_s3 + $0x58] sm:$0xff]  ;;  %v45_v24 = vand.u32 127, %v44_v23  ;;  %v72_v29 = vperm.slane %v2160_v2, 1  ;;  %v73_v30 = vperm.slane %v2160_v2, 0  ;;  %2005 = vrcp.f32 %v2103_v42 }
   0x3   :  { %v43_v6 = vld [vmem:[%s2671_s0 + $0x8] sm:$0xff]  ;;  %v36_v8 = vld [vmem:[%s2672_s3 + $0x50] sm:$0xff]  ;;  %v34_v10 = vld [vmem:[%s2672_s3 + $0x40] sm:$0xff]  ;;  %vm226_vm14 = vcmask 64512   ;;  %s2108_s9 = smov 64   ;;  %s2110_s12 = smov 8  }
   0x4   :  { %77 = vmatpush.msra.mxu0 %v40_v3  ;;  %v35_v9 = vld [vmem:[%s2672_s3 + $0x48] sm:$0xff]  ;;  %v33_v11 = vld [vmem:[%s2672_s3 + $0x38] sm:$0xff]  ;;  %v32_v12 = vld [vmem:[%s2672_s3 + $0x30] sm:$0xff]  ;;  %s2111_s13 = smov 16   ;;  %s2112_s14 = smov 24   ;;  %vm723_vm15 = vcmask 130048  }
   0x5   :  { %v31_v13 = vld [vmem:[%s2672_s3 + $0x28] sm:$0xff]  ;;  %v30_v14 = vld [vmem:[%s2672_s3 + $0x20] sm:$0xff]  ;;  %v29_v15 = vld [vmem:[%s2672_s3 + $0x18] sm:$0xff] }
   0x6   :  { %78 = vmatpush.msra.mxu0 %v2169_v4  ;;  %v28_v16 = vld [vmem:[%s2672_s3 + $0x10] sm:$0xff]  ;;  %v27_v17 = vld [vmem:[%s2672_s3 + $0x8] sm:$0xff]  ;;  %v26_v18 = vld [vmem:[%s2672_s3] sm:$0xff] }
   0x7   :  { %v58_v19 = vld [vmem:[%s2673_s1] sm:$0xff]  ;;  %v59_v21 = vld [vmem:[%s2673_s1 + $0x8] sm:$0xff]  ;;  %v2235_v59 = vld [vmem:[%s2675_s5 + $0x30] sm:$0xff] }
   0x8   :  { %79 = vmatpush.msra.mxu0 %v38_v5  ;;  %vm60_vm0 = vcmp.eq.s32.totalorder %v58_v19, 1  ;;  %vm61_vm1 = vcmp.eq.s32.totalorder %v59_v21, 1  ;;  %v2006_v43 = vpop.eup %2005  ;;  %195 = vmatpush.msra.mxu1 %v2235_v59  ;;  %v2241_v60 = vld [vmem:[%s2675_s5 + $0x20] sm:$0xff]  ;;  %v2247_v61 = vld [vmem:[%s2675_s5 + $0x10] sm:$0xff] }
   0x9   :  { %v62_v20 = vsel %vm60_vm0, 1, %v2101_v0  ;;  %v63_v22 = vsel %vm61_vm1, 1, %v2101_v0  ;;  %v111_v44 = vmul.f32 32.0, %v2006_v43  ;;  %vm115_vm7 = vweird.f32 %v2006_v43  ;;  %v2253_v62 = vld [vmem:[%s2675_s5] sm:$0xff] }
   0xa   :  { %50 = vperm.xlu0 %1951, %v43_v6   ;;  %80 = vmatpush.msra.mxu0 %v37_v7  ;;  %v1968_v63 = vpack.i.bf16 %v2241_v60, %v2235_v59  ;;  %v1973_v0 = vpack.i.bf16 %v2253_v62, %v2247_v61  ;;  %v2004_v19 = vld [vmem:[%s2674_s4 + $0x1] ss:$0 sm:$0xff]  ;;  %vm726_vm0 = vcmask 195584  }
   0xb   :  { %65 = vperm.xlu1 %1952, %v62_v20   ;;  %v112_v45 = vsub.f32 1.0, %v111_v44  ;;  %196 = vmatpush.msra.mxu1 %v2241_v60 }
   0xc   :  { %81 = vmatpush.msra.mxu0 %v36_v8 }
   0xd   :  { %v113_v46 = vmul.f32 %v2006_v43, %v112_v45  ;;  %197 = vmatpush.msra.mxu1 %v2247_v61 }
   0xe   :  { %82 = vmatpush.msra.mxu0 %v35_v9 }
   0xf   :  { %v114_v47 = vadd.f32 %v2006_v43, %v113_v46  ;;  %198 = vmatpush.msra.mxu1 %v2253_v62 }
  0x10   :  { %83 = vmatpush.msra.mxu0 %v34_v10 }
  0x11   :  { %v2226_v48 = vsel %vm115_vm7, %v2006_v43, %v114_v47 }
  0x12   :  { %84 = vmatpush.msra.mxu0 %v33_v11 }
  0x13   :  { %68 = vperm.xlu1 %1952, %v63_v22  }
  0x14   :  { %85 = vmatpush.msra.mxu0 %v32_v12 }
  0x16   :  { %86 = vmatpush.msra.mxu0 %v31_v13 }
  0x18   :  { %87 = vmatpush.msra.mxu0 %v30_v14 }
  0x1a   :  { %88 = vmatpush.msra.mxu0 %v29_v15  ;;  %v2003_v15 = vld [vmem:[%s2674_s4] ss:$0 sm:$0xff] }
  0x1c   :  { %89 = vmatpush.msra.mxu0 %v28_v16 }
  0x1e   :  { %90 = vmatpush.msra.mxu0 %v27_v17 }
  0x20   :  { %91 = vmatpush.msra.mxu0 %v26_v18 }
  0x74   :  { %v48_v25 = vpop.permute.xlu0 %47 }
  0x75   :  { %vm52_vm2 = vcmp.eq.s32.totalorder %v45_v24, %v48_v25 }
  0x76   :  { %1855 = vmatmul.msk.f32.vlgmr.msra.gmra.mxu0 %vm52_vm2, %v2102_v26 }
  0x7c   :  { %v51_v27 = vpop.permute.xlu0 %50 }
  0x7d   :  { %vm53_vm3 = vcmp.eq.s32.totalorder %v45_v24, %v51_v27  ;;  %v66_v28 = vpop.permute.xlu1 %65 }
  0x7e   :  { %1856 = vmatmul.msk.f32.gmra.mxu0 %vm53_vm3, %v2102_v26  ;;  %vm70_vm4 = vcmp.eq.s32.totalorder %v66_v28, 1 }
  0x7f   :  { %v74_v32 = vsel %vm70_vm4, %v72_v29, %v73_v30 }
  0x85   :  { %v69_v35 = vpop.permute.xlu1 %68 }
  0x86   :  { %vm71_vm6 = vcmp.eq.s32.totalorder %v69_v35, 1 }
  0x87   :  { %v75_v39 = vsel %vm71_vm6, %v72_v29, %v73_v30  ;;  %v2279_v29 = vld [vmem:[%s2676_s6] sm:$0xff] }
  0x88   :  { %v176_v30 = vperm.slane %v2279_v29, 0 }
  0xf3   :  { %v93_v31 = vpop.f32.mrf.mxu0 }
  0xf4   :  { %v94_v33 = vadd.f32 %v93_v31, %v2169_v4 }
  0xf6   :  { %v99_v34 = vadd.f32 %v94_v33, %v74_v32 }
  0xf8   :  { %v104_v36 = vsel %vm103_vm5, %v99_v34, 0.0 }
  0xf9   :  { %105 = vadd.xlane.f32.xlu2 %v104_v36 }
  0xfb   :  { %v96_v37 = vpop.f32.mrf.mxu0 }
  0xfc   :  { %v97_v38 = vadd.f32 %v96_v37, %v2169_v4 }
  0xfe   :  { %v100_v40 = vadd.f32 %v97_v38, %v75_v39 }
 0x100   :  { %v107_v41 = vsel %vm103_vm5, %v100_v40, 0.0 }
 0x101   :  { %108 = vadd.xlane.f32.xlu2 %v107_v41 }
 0x16c   :  { %v106_v49 = vpop.xlane.xlu2 %105 }
 0x16d   :  { %v117_v50 = vmul.f32 %v2226_v48, %v106_v49 }
 0x16f   :  { %v119_v51 = vsub.f32 %v99_v34, %v117_v50 }
 0x171   :  { %v121_v52 = vmul.f32 %v119_v51, %v119_v51 }
 0x173   :  { %v123_v53 = vsel %vm103_vm5, %v121_v52, 0.0 }
 0x174   :  { %124 = vadd.xlane.f32.xlu0 %v123_v53  ;;  %v109_v54 = vpop.xlane.xlu2 %108 }
 0x175   :  { %v118_v55 = vmul.f32 %v2226_v48, %v109_v54 }
 0x177   :  { %v120_v56 = vsub.f32 %v100_v40, %v118_v55  ;;  %v161_v55 = vld [vmem:[%s2677_s2] sm:$0x3]  ;;  %s2109_s2 = smov 32  }
 0x179   :  { %v122_v57 = vmul.f32 %v120_v56, %v120_v56 }
 0x17b   :  { %v126_v58 = vsel %vm103_vm5, %v122_v57, 0.0 }
 0x17c   :  { %127 = vadd.xlane.f32.xlu1 %v126_v58 }
 0x1e7   :  { %v125_v1 = vpop.xlane.xlu0 %124 }
 0x1e8   :  { %v129_v2 = vmul.f32 %v125_v1, %v2226_v48 }
 0x1ea   :  { %v131_v3 = vadd.f32 1e-12, %v129_v2 }
 0x1ec   :  { %2007 = vrsqrt.f32 %v131_v3  ;;  %vm139_vm9 = vweird.f32 %v131_v3 }
 0x1ef   :  { %v128_v4 = vpop.xlane.xlu1 %127 }
 0x1f0   :  { %v130_v5 = vmul.f32 %v128_v4, %v2226_v48 }
 0x1f2   :  { %v2008_v6 = vpop.eup %2007  ;;  %v132_v7 = vadd.f32 1e-12, %v130_v5 }
 0x1f3   :  { %v134_v8 = vmul.f32 %v2008_v6, %v131_v3  ;;  %vm140_vm8 = vweird.f32 %v2008_v6 }
 0x1f4   :  { %2009 = vrsqrt.f32 %v132_v7  ;;  %vm141_vm10 = vmor %vm139_vm9, %vm140_vm8  ;;  %vm149_vm12 = vweird.f32 %v132_v7  ;;  %vm888_vm8 = vcmask 523264  }
 0x1f5   :  { %v135_v9 = vmul.f32 %v2008_v6, %v134_v8 }
 0x1f7   :  { %v136_v10 = vmul.f32 0.5, %v135_v9 }
 0x1f9   :  { %v137_v11 = vsub.f32 1.5, %v136_v10 }
 0x1fa   :  { %v2010_v12 = vpop.eup %2009 }
 0x1fb   :  { %v138_v13 = vmul.f32 %v2008_v6, %v137_v11  ;;  %v144_v14 = vmul.f32 %v2010_v12, %v132_v7  ;;  %vm150_vm11 = vweird.f32 %v2010_v12 }
 0x1fc   :  { %vm151_vm13 = vmor %vm149_vm12, %vm150_vm11 }
 0x1fd   :  { %v142_v16 = vsel %vm141_vm10, %v2008_v6, %v138_v13  ;;  %v145_v17 = vmul.f32 %v2010_v12, %v144_v14 }
 0x1fe   :  { %v153_v18 = vmul.f32 %v142_v16, %v119_v51 }
 0x1ff   :  { %v146_v20 = vmul.f32 0.5, %v145_v17 }
 0x200   :  { %v156_v21 = vmul.f32 %v2003_v15, %v153_v18 }
 0x201   :  { %v147_v22 = vsub.f32 1.5, %v146_v20 }
 0x202   :  { %v2268_v23 = vadd.f32 %v2004_v19, %v156_v21 }
 0x203   :  { %v148_v24 = vmul.f32 %v2010_v12, %v147_v22 }
 0x204   :  { %1857 = vmatmul.msk.f32.vlgmr.msra.gmra.mxu1 %vm103_vm5, %v2268_v23 }
 0x205   :  { %v152_v25 = vsel %vm151_vm13, %v2010_v12, %v148_v24 }
 0x206   :  { %v154_v26 = vmul.f32 %v152_v25, %v120_v56  ;;  %v162_v56 = vcvt.s32.f32 %v161_v55 }
 0x208   :  { %v157_v27 = vmul.f32 %v2003_v15, %v154_v26  ;;  %v163_v2 = vsub.f32 1.0, %v162_v56 }
 0x20a   :  { %v2272_v28 = vadd.f32 %v2004_v19, %v157_v27  ;;  %v164_v3 = vmul.f32 -10000.0, %v163_v2 }
 0x20c   :  { %1858 = vmatmul.msk.f32.gmra.mxu1 %vm103_vm5, %v2272_v28  ;;  %v2333_v4 = vperm.slane %v164_v3, 0  ;;  %v166_v7 = vrot.slane %v164_v3, 1 }
 0x20e   :  { %v2336_v9 = vperm.slane %v166_v7, 0 }
 0x281   :  { %v200_v31 = vpop.f32.mrf.mxu1 }
 0x282   :  { %v201_v32 = vadd.f32 %v200_v31, %v176_v30 }
 0x284   :  { %208 = vrot.lane.b32.xlu2 %v201_v32, %s2104_s28 }
 0x289   :  { %v203_v33 = vpop.f32.mrf.mxu1 }
 0x28a   :  { %v204_v34 = vadd.f32 %v203_v33, %v176_v30 }
 0x28c   :  { %218 = vrot.lane.b32.xlu1 %v204_v34, %s2105_s29  ;;  %214 = vrot.lane.b32.xlu0 %v204_v34, %s2106_s30 }
 0x28d   :  { %210 = vrot.lane.b32.xlu2 %v204_v34, %s2104_s28 }
 0x295   :  { %212 = vrot.lane.b32.xlu2 %v201_v32, %s2106_s30 }
 0x29d   :  { %216 = vrot.lane.b32.xlu2 %v201_v32, %s2105_s29 }
 0x2a5   :  { %224 = vrot.lane.b32.xlu2 %v201_v32, %s2107_s8 }
 0x2ad   :  { %251 = vrot.lane.b32.xlu2 %v204_v34, %s2107_s8 }
 0x2de   :  { %v209_v35 = vpop.permute.xlu2 %208 }
 0x2df   :  { %277 = vrot.lane.b32.xlu2 %v209_v35, %s2107_s8  ;;  %v1953_v42 = vpack.i.bf16 %v209_v35, %v204_v34 }
 0x2e7   :  { %v211_v36 = vpop.permute.xlu2 %210 }
 0x2e8   :  { %303 = vrot.lane.b32.xlu0 %v211_v36, %s2107_s8  ;;  %v1958_v43 = vpack.i.bf16 %v211_v36, %v201_v32 }
 0x2ef   :  { %v2292_v37 = vpop.permute.xlu2 %212 }
 0x2f0   :  { %329 = vrot.lane.b32.xlu1 %v2292_v37, %s2107_s8 }
 0x2f7   :  { %v2296_v38 = vpop.permute.xlu2 %216 }
 0x2f8   :  { %381 = vrot.lane.b32.xlu0 %v2296_v38, %s2107_s8  ;;  %v1963_v56 = vpack.i.bf16 %v2292_v37, %v2296_v38 }
 0x2fe   :  { %v2300_v39 = vpop.permute.xlu1 %218  ;;  %v2302_v40 = vpop.permute.xlu0 %214 }
 0x2ff   :  { %v225_v41 = vpop.permute.xlu2 %224  ;;  %355 = vrot.lane.b32.xlu2 %v2302_v40, %s2107_s8  ;;  %407 = vrot.lane.b32.xlu1 %v2300_v39, %s2107_s8 }
 0x300   :  { %1859 = vmatpush.xpose.msk.msra.mxu2 %vm226_vm14, %v225_v41 }
 0x303   :  { %1860 = vmatmul.msk.f32.vlgmr.msra.gmra.mxu2 %vm226_vm14, %v201_v32 }
 0x307   :  { %v252_v44 = vpop.permute.xlu2 %251  ;;  %1954 = vrot.lane.b32.xlu2 %v1953_v42, %s2108_s9  ;;  %1959 = vrot.lane.b32.xlu1 %v1958_v43, %s2108_s9 }
 0x308   :  { %1861 = vmatpush.xpose.msk.msra.mxu3 %vm226_vm14, %v252_v44 }
 0x30b   :  { %1862 = vmatmul.msk.f32.vlgmr.msra.gmra.mxu3 %vm226_vm14, %v204_v34 }
 0x339   :  { %v278_v45 = vpop.permute.xlu2 %277 }
 0x33a   :  { %1863 = vmatpush.xpose.msk.msrb.mxu2 %vm226_vm14, %v278_v45 }
 0x33d   :  { %1864 = vmatmul.msk.f32.vlgmr.msrb.gmra.mxu2 %vm226_vm14, %v209_v35 }
 0x359   :  { %v356_v46 = vpop.permute.xlu2 %355 }
 0x35a   :  { %v304_v47 = vpop.permute.xlu0 %303 }
 0x35b   :  { %1865 = vmatpush.xpose.msk.msrb.mxu3 %vm226_vm14, %v304_v47 }
 0x35e   :  { %1866 = vmatmul.msk.f32.vlgmr.msrb.gmra.mxu3 %vm226_vm14, %v211_v36 }
 0x35f   :  { %1869 = vmatpush.xpose.msk.msra.mxu3 %vm226_vm14, %v356_v46 }
 0x361   :  { %v1955_v50 = vpop.permute.xlu2 %1954 }
 0x362   :  { %v330_v49 = vpop.permute.xlu1 %329  ;;  %v1956_v51 = vunpack.i.l.bf16 %v1955_v50  ;;  %v1957_v53 = vunpack.i.h.bf16 %v1955_v50 }
 0x363   :  { %1867 = vmatpush.xpose.msk.msra.mxu2 %vm226_vm14, %v330_v49 }
 0x366   :  { %1868 = vmatmul.msk.f32.vlgmr.msra.gmra.mxu2 %vm226_vm14, %v2292_v37  ;;  %1870 = vmatmul.msk.f32.vlgmr.msra.gmra.mxu3 %vm226_vm14, %v2302_v40 }
 0x36a   :  { %v382_v52 = vpop.permute.xlu0 %381 }
 0x36b   :  { %1871 = vmatpush.xpose.msk.msrb.mxu1 %vm226_vm14, %v382_v52 }
 0x36e   :  { %1872 = vmatmul.msk.f32.vlgmr.msrb.gmra.mxu1 %vm226_vm14, %v2296_v38 }
 0x36f   :  { %536 = vmatpush.msra.mxu1 %v1956_v51 }
 0x371   :  { %v408_v54 = vpop.permute.xlu1 %407 }
 0x372   :  { %1873 = vmatpush.xpose.msk.msrb.mxu2 %vm226_vm14, %v408_v54 }
 0x375   :  { %1874 = vmatmul.msk.f32.vlgmr.msrb.gmra.mxu2 %vm226_vm14, %v2300_v39 }
 0x376   :  { %562 = vmatpush.msra.mxu2 %v1957_v53 }
 0x379   :  { %v1960_v57 = vpop.permute.xlu1 %1959 }
 0x37a   :  { %v1962_v58 = vunpack.i.h.bf16 %v1960_v57  ;;  %v1961_v1 = vunpack.i.l.bf16 %v1960_v57 }
 0x37c   :  { %510 = vmatpush.msrb.mxu3 %v1961_v1 }
 0x37e   :  { %588 = vmatpush.msra.mxu3 %v1962_v58 }
 0x386   :  { %v248_v5 = vpop.f32.mrf.mxu2 }
 0x387   :  { %v249_v6 = vadd.f32 %v248_v5, %v2333_v4 }
 0x389   :  { %v433_v8 = vmul.f32 1.442695, %v249_v6 }
 0x38b   :  { %2011 = vpow2.f32 %v433_v8 }
 0x38e   :  { %v274_v10 = vpop.f32.mrf.mxu3 }
 0x38f   :  { %v275_v11 = vadd.f32 %v274_v10, %v2336_v9 }
 0x391   :  { %v2012_v12 = vpop.eup %2011  ;;  %v435_v13 = vmul.f32 1.442695, %v275_v11 }
 0x392   :  { %v449_v14 = vsel %vm226_vm14, %v2012_v12, 0.0 }
 0x393   :  { %2013 = vpow2.f32 %v435_v13  ;;  %450 = vadd.xlane.f32.xlu0 %v449_v14 }
 0x399   :  { %v2014_v15 = vpop.eup %2013 }
 0x39a   :  { %v452_v16 = vsel %vm226_vm14, %v2014_v15, 0.0 }
 0x39b   :  { %453 = vadd.xlane.f32.xlu1 %v452_v16 }
 0x3c0   :  { %v300_v17 = vpop.f32.mrf.mxu2 }
 0x3c1   :  { %v301_v18 = vadd.f32 %v300_v17, %v2333_v4 }
 0x3c3   :  { %v437_v19 = vmul.f32 1.442695, %v301_v18 }
 0x3c5   :  { %2015 = vpow2.f32 %v437_v19 }
 0x3cb   :  { %v2016_v20 = vpop.eup %2015 }
 0x3cc   :  { %v455_v21 = vsel %vm226_vm14, %v2016_v20, 0.0 }
 0x3cd   :  { %456 = vadd.xlane.f32.xlu0 %v455_v21 }
 0x3e1   :  { %v326_v22 = vpop.f32.mrf.mxu3 }
 0x3e2   :  { %v327_v34 = vadd.f32 %v326_v22, %v2336_v9 }
 0x3e4   :  { %v439_v36 = vmul.f32 1.442695, %v327_v34 }
 0x3e9   :  { %v352_v24 = vpop.f32.mrf.mxu2  ;;  %v378_v25 = vpop.f32.mrf.mxu3 }
 0x3ea   :  { %v353_v26 = vadd.f32 %v352_v24, %v2333_v4  ;;  %v379_v27 = vadd.f32 %v378_v25, %v2336_v9 }
 0x3eb   :  { %v404_v30 = vpop.f32.mrf.mxu1 }
 0x3ec   :  { %v441_v31 = vmul.f32 1.442695, %v353_v26  ;;  %v443_v32 = vmul.f32 1.442695, %v379_v27  ;;  %v405_v33 = vadd.f32 %v404_v30, %v2333_v4 }
 0x3ee   :  { %2017 = vpow2.f32 %v441_v31  ;;  %v445_v35 = vmul.f32 1.442695, %v405_v33 }
 0x3ef   :  { %2019 = vpow2.f32 %v443_v32 }
 0x3f0   :  { %2021 = vpow2.f32 %v445_v35 }
 0x3f1   :  { %2023 = vpow2.f32 %v439_v36 }
 0x3f4   :  { %v2018_v41 = vpop.eup %2017 }
 0x3f5   :  { %v2347_v42 = vpop.eup %2019  ;;  %v461_v43 = vsel %vm226_vm14, %v2018_v41, 0.0 }
 0x3f6   :  { %v2350_v44 = vpop.eup %2021  ;;  %462 = vadd.xlane.f32.xlu0 %v461_v43  ;;  %v464_v45 = vsel %vm226_vm14, %v2347_v42, 0.0 }
 0x3f7   :  { %465 = vadd.xlane.f32.xlu1 %v464_v45  ;;  %v467_v46 = vsel %vm226_vm14, %v2350_v44, 0.0  ;;  %v2024_v51 = vpop.eup %2023 }
 0x3f8   :  { %468 = vadd.xlane.f32.xlu2 %v467_v46  ;;  %v430_v47 = vpop.f32.mrf.mxu2  ;;  %v458_v52 = vsel %vm226_vm14, %v2024_v51, 0.0 }
 0x3f9   :  { %v431_v49 = vadd.f32 %v430_v47, %v2336_v9 }
 0x3fb   :  { %v447_v50 = vmul.f32 1.442695, %v431_v49 }
 0x3fd   :  { %2025 = vpow2.f32 %v447_v50 }
 0x400   :  { %459 = vadd.xlane.f32.xlu2 %v458_v52 }
 0x403   :  { %v2026_v53 = vpop.eup %2025 }
 0x404   :  { %v470_v54 = vsel %vm226_vm14, %v2026_v53, 0.0 }
 0x405   :  { %471 = vadd.xlane.f32.xlu1 %v470_v54 }
 0x406   :  { %v451_v55 = vpop.xlane.xlu0 %450 }
 0x407   :  { %2027 = vrcp.f32 %v451_v55 }
 0x40a   :  { %1964 = vrot.lane.b32.xlu0 %v1963_v56, %s2108_s9 }
 0x40d   :  { %v2028_v57 = vpop.eup %2027 }
 0x40e   :  { %v481_v58 = vmul.f32 %v2028_v57, %v2012_v12  ;;  %v454_v1 = vpop.xlane.xlu1 %453 }
 0x40f   :  { %2029 = vrcp.f32 %v454_v1 }
 0x410   :  { %1875 = vmatmul.msk.f32.vlgmr.msrb.gmra.mxu3 %vm226_vm14, %v481_v58 }
 0x412   :  { %1969 = vrot.lane.b32.xlu0 %v1968_v63, %s2109_s2 }
 0x415   :  { %v2030_v2 = vpop.eup %2029 }
 0x416   :  { %v482_v3 = vmul.f32 %v2030_v2, %v2014_v15 }
 0x418   :  { %671 = vrot.lane.b32.xlu2 %v2300_v39, %s2108_s9  ;;  %1876 = vmatmul.msk.f32.vlgmr.msra.gmra.mxu1 %vm226_vm14, %v482_v3 }
 0x41a   :  { %1974 = vrot.lane.b32.xlu0 %v1973_v0, %s2109_s2 }
 0x41e   :  { %619 = vrot.lane.b32.xlu1 %v2302_v40, %s2108_s9 }
 0x440   :  { %v457_v5 = vpop.xlane.xlu0 %456 }
 0x441   :  { %2031 = vrcp.f32 %v457_v5 }
 0x447   :  { %v2032_v37 = vpop.eup %2031 }
 0x448   :  { %v483_v38 = vmul.f32 %v2032_v37, %v2016_v20 }
 0x44a   :  { %1877 = vmatmul.msk.f32.vlgmr.msra.gmra.mxu2 %vm226_vm14, %v483_v38 }
 0x469   :  { %v463_v6 = vpop.xlane.xlu0 %462 }
 0x46a   :  { %v466_v40 = vpop.xlane.xlu1 %465 }
 0x46b   :  { %v469_v39 = vpop.xlane.xlu2 %468 }
 0x473   :  { %v460_v7 = vpop.xlane.xlu2 %459 }
 0x474   :  { %2033 = vrcp.f32 %v460_v7 }
 0x475   :  { %2035 = vrcp.f32 %v463_v6 }
 0x476   :  { %2037 = vrcp.f32 %v469_v39 }
 0x478   :  { %v472_v10 = vpop.xlane.xlu1 %471 }
 0x479   :  { %2039 = vrcp.f32 %v472_v10 }
 0x47a   :  { %v2034_v8 = vpop.eup %2033  ;;  %2041 = vrcp.f32 %v466_v40 }
 0x47b   :  { %v2036_v11 = vpop.eup %2035  ;;  %v484_v12 = vmul.f32 %v2034_v8, %v2024_v51  ;;  %v672_v62 = vpop.permute.xlu2 %671 }
 0x47c   :  { %v1965_v13 = vpop.permute.xlu0 %1964  ;;  %v485_v63 = vmul.f32 %v2036_v11, %v2018_v41  ;;  %v2038_v61 = vpop.eup %2037  ;;  %v172_v11 = vld [vmem:[%s2675_s5 + $0x28] sm:$0xff] }
 0x47d   :  { %v1967_v59 = vunpack.i.h.bf16 %v1965_v13  ;;  %v1966_v60 = vunpack.i.l.bf16 %v1965_v13  ;;  %1878 = vmatmul.msk.f32.vlgmr.msra.gmra.mxu3 %vm226_vm14, %v484_v12  ;;  %v487_v14 = vmul.f32 %v2038_v61, %v2350_v44  ;;  %v170_v12 = vld [vmem:[%s2675_s5 + $0x18] sm:$0xff]  ;;  %v168_v13 = vld [vmem:[%s2675_s5 + $0x8] sm:$0xff] }
 0x47f   :  { %614 = vmatpush.msrb.mxu1 %v1967_v59  ;;  %666 = vmatpush.msrb.mxu3 %v1966_v60  ;;  %v2040_v0 = vpop.eup %2039 }
 0x480   :  { %1879 = vmatmul.msk.f32.vlgmr.msrb.gmra.mxu1 %vm226_vm14, %v485_v63  ;;  %v488_v15 = vmul.f32 %v2040_v0, %v2026_v53  ;;  %v2042_v16 = vpop.eup %2041  ;;  %v729_v53 = vperm.slane %v2279_v29, 1 }
 0x481   :  { %692 = vmatpush.msra.mxu1 %v672_v62  ;;  %v486_v17 = vmul.f32 %v2042_v16, %v2347_v42 }
 0x484   :  { %v1970_v30 = vpop.permute.xlu0 %1969 }
 0x485   :  { %1881 = vmatmul.msk.f32.vlgmr.msrb.gmra.mxu3 %vm226_vm14, %v487_v14  ;;  %v1972_v31 = vunpack.i.h.bf16 %v1970_v30  ;;  %v1971_v32 = vunpack.i.l.bf16 %v1970_v30 }
 0x487   :  { %764 = vmatpush.msrb.mxu1 %v1971_v32 }
 0x488   :  { %1882 = vmatmul.msk.f32.vlgmr.msra.gmra.mxu1 %vm226_vm14, %v488_v15 }
 0x489   :  { %765 = vmatpush.msrb.mxu1 %v1972_v31 }
 0x48c   :  { %v1975_v33 = vpop.permute.xlu0 %1974 }
 0x48d   :  { %v1977_v34 = vunpack.i.h.bf16 %v1975_v33  ;;  %v1976_v35 = vunpack.i.l.bf16 %v1975_v33 }
 0x48f   :  { %766 = vmatpush.msrb.mxu1 %v1976_v35 }
 0x490   :  { %v620_v18 = vpop.permute.xlu1 %619 }
 0x491   :  { %640 = vmatpush.msrb.mxu2 %v620_v18  ;;  %767 = vmatpush.msrb.mxu1 %v1977_v34 }
 0x492   :  { %1880 = vmatmul.msk.f32.vlgmr.msrb.gmra.mxu2 %vm226_vm14, %v486_v17 }
 0x493   :  { %v512_v21 = vpop.f32.mrf.mxu3 }
 0x495   :  { %v538_v20 = vpop.f32.mrf.mxu1 }
 0x4cd   :  { %v564_v19 = vpop.f32.mrf.mxu2 }
 0x4ce   :  { %699 = vrot.lane.b32.xlu2 %v564_v19, %s2110_s12 }
 0x4fd   :  { %v616_v22 = vpop.f32.mrf.mxu1 }
 0x4fe   :  { %707 = vrot.lane.b32.xlu2 %v616_v22, %s2111_s13  ;;  %v821_v22 = vperm.slane %v2279_v29, 2 }
 0x500   :  { %v590_v24 = vpop.f32.mrf.mxu3 }
 0x501   :  { %701 = vrot.lane.b32.xlu1 %v590_v24, %s2110_s12 }
 0x505   :  { %v694_v26 = vpop.f32.mrf.mxu1 }
 0x508   :  { %v668_v25 = vpop.f32.mrf.mxu3 }
 0x509   :  { %715 = vrot.lane.b32.xlu0 %v668_v25, %s2112_s14 }
 0x511   :  { %717 = vrot.lane.b32.xlu0 %v694_v26, %s2112_s14 }
 0x515   :  { %v642_v27 = vpop.f32.mrf.mxu2 }
 0x516   :  { %709 = vrot.lane.b32.xlu2 %v642_v27, %s2111_s13  ;;  %v824_v27 = vperm.slane %v2279_v29, 3 }
 0x528   :  { %v700_v36 = vpop.permute.xlu2 %699 }
 0x529   :  { %v721_v42 = vsel %vm226_vm14, %v512_v21, %v700_v36 }
 0x558   :  { %v708_v41 = vpop.permute.xlu2 %707 }
 0x559   :  { %v724_v43 = vsel %vm723_vm15, %v721_v42, %v708_v41 }
 0x570   :  { %v710_v49 = vpop.permute.xlu2 %709 }
 0x573   :  { %v702_v46 = vpop.permute.xlu1 %701 }
 0x574   :  { %v722_v47 = vsel %vm226_vm14, %v538_v20, %v702_v46 }
 0x575   :  { %v725_v51 = vsel %vm723_vm15, %v722_v47, %v710_v49  ;;  %v827_v47 = vperm.slane %v2279_v29, 4 }
 0x57b   :  { %v716_v44 = vpop.permute.xlu0 %715 }
 0x57c   :  { %v727_v45 = vsel %vm726_vm0, %v724_v43, %v716_v44 }
 0x57d   :  { %1883 = vmatmul.msk.f32.vlgmr.msrb.gmra.mxu1 %vm103_vm5, %v727_v45 }
 0x583   :  { %v718_v50 = vpop.permute.xlu0 %717 }
 0x584   :  { %v728_v52 = vsel %vm726_vm0, %v725_v51, %v718_v50 }
 0x585   :  { %1884 = vmatmul.msk.f32.gmra.mxu1 %vm103_vm5, %v728_v52 }
 0x5fa   :  { %v769_v54 = vpop.f32.mrf.mxu1 }
 0x5fb   :  { %v770_v55 = vadd.f32 %v769_v54, %v729_v53 }
 0x5fd   :  { %v775_v56 = vadd.f32 %v770_v55, %v2268_v23 }
 0x5ff   :  { %v777_v57 = vsel %vm103_vm5, %v775_v56, 0.0 }
 0x600   :  { %778 = vadd.xlane.f32.xlu1 %v777_v57 }
 0x602   :  { %v772_v58 = vpop.f32.mrf.mxu1 }
 0x603   :  { %v773_v1 = vadd.f32 %v772_v58, %v729_v53 }
 0x605   :  { %v776_v2 = vadd.f32 %v773_v1, %v2272_v28  ;;  %v174_v28 = vld [vmem:[%s2675_s5 + $0x38] sm:$0xff] }
 0x606   :  { %846 = vmatpush.msra.mxu2 %v174_v28 }
 0x607   :  { %v780_v3 = vsel %vm103_vm5, %v776_v2, 0.0 }
 0x608   :  { %781 = vadd.xlane.f32.xlu2 %v780_v3  ;;  %847 = vmatpush.msra.mxu2 %v172_v11 }
 0x60a   :  { %848 = vmatpush.msra.mxu2 %v170_v12 }
 0x60c   :  { %849 = vmatpush.msra.mxu2 %v168_v13 }
 0x620   :  { %886 = vrot.lane.b32.xlu2 %v174_v28, %s2108_s9 }
 0x673   :  { %v779_v5 = vpop.xlane.xlu1 %778 }
 0x674   :  { %v783_v37 = vmul.f32 %v779_v5, %v2226_v48 }
 0x676   :  { %v785_v38 = vsub.f32 %v775_v56, %v783_v37 }
 0x678   :  { %v787_v39 = vmul.f32 %v785_v38, %v785_v38 }
 0x67a   :  { %v789_v6 = vsel %vm103_vm5, %v787_v39, 0.0 }
 0x67b   :  { %v782_v40 = vpop.xlane.xlu2 %781  ;;  %790 = vadd.xlane.f32.xlu0 %v789_v6 }
 0x67c   :  { %v784_v23 = vmul.f32 %v782_v40, %v2226_v48 }
 0x67e   :  { %v786_v7 = vsub.f32 %v776_v2, %v784_v23 }
 0x680   :  { %v788_v8 = vmul.f32 %v786_v7, %v786_v7 }
 0x682   :  { %v792_v10 = vsel %vm103_vm5, %v788_v8, 0.0 }
 0x683   :  { %793 = vadd.xlane.f32.xlu1 %v792_v10  ;;  %v887_v43 = vpop.permute.xlu2 %886  ;;  %v875_v10 = vperm.slane %v2279_v29, 5 }
 0x684   :  { %1887 = vmatpush.xpose.msk.msra.mxu3 %vm888_vm8, %v887_v43 }
 0x68f   :  { %884 = vrot.lane.b32.xlu0 %v172_v11, %s2108_s9 }
 0x697   :  { %880 = vrot.lane.b32.xlu0 %v168_v13, %s2108_s9 }
 0x69c   :  { %882 = vrot.lane.b32.xlu1 %v170_v12, %s2108_s9 }
 0x6ee   :  { %v791_v59 = vpop.xlane.xlu0 %790 }
 0x6ef   :  { %v795_v60 = vmul.f32 %v791_v59, %v2226_v48 }
 0x6f1   :  { %v797_v63 = vadd.f32 1e-12, %v795_v60 }
 0x6f3   :  { %2043 = vrsqrt.f32 %v797_v63  ;;  %vm805_vm2 = vweird.f32 %v797_v63 }
 0x6f6   :  { %v794_v61 = vpop.xlane.xlu1 %793 }
 0x6f7   :  { %v796_v62 = vmul.f32 %v794_v61, %v2226_v48 }
 0x6f9   :  { %v2044_v0 = vpop.eup %2043  ;;  %v798_v14 = vadd.f32 1e-12, %v796_v62 }
 0x6fa   :  { %v800_v15 = vmul.f32 %v2044_v0, %v797_v63  ;;  %vm806_vm1 = vweird.f32 %v2044_v0 }
 0x6fb   :  { %2045 = vrsqrt.f32 %v798_v14  ;;  %vm807_vm3 = vmor %vm805_vm2, %vm806_vm1  ;;  %vm815_vm6 = vweird.f32 %v798_v14 }
 0x6fc   :  { %v801_v16 = vmul.f32 %v2044_v0, %v800_v15 }
 0x6fe   :  { %v802_v17 = vmul.f32 0.5, %v801_v16 }
 0x700   :  { %v803_v18 = vsub.f32 1.5, %v802_v17 }
 0x701   :  { %v2046_v19 = vpop.eup %2045  ;;  %v885_v44 = vpop.permute.xlu0 %884 }
 0x702   :  { %v804_v20 = vmul.f32 %v2044_v0, %v803_v18  ;;  %v810_v21 = vmul.f32 %v2046_v19, %v798_v14  ;;  %vm816_vm4 = vweird.f32 %v2046_v19  ;;  %1888 = vmatpush.xpose.msk.msra.mxu3 %vm888_vm8, %v885_v44 }
 0x703   :  { %vm817_vm7 = vmor %vm815_vm6, %vm816_vm4 }
 0x704   :  { %v808_v24 = vsel %vm807_vm3, %v2044_v0, %v804_v20  ;;  %v811_v25 = vmul.f32 %v2046_v19, %v810_v21 }
 0x705   :  { %v819_v26 = vmul.f32 %v808_v24, %v785_v38  ;;  %v2452_v24 = vld [vmem:[%s2675_s5 + $0x60] sm:$0xff] }
 0x706   :  { %v812_v30 = vmul.f32 0.5, %v811_v25  ;;  %v2458_v25 = vld [vmem:[%s2675_s5 + $0x50] sm:$0xff] }
 0x707   :  { %v822_v31 = vmul.f32 %v821_v22, %v819_v26  ;;  %v2464_v26 = vld [vmem:[%s2675_s5 + $0x40] sm:$0xff] }
 0x708   :  { %v813_v32 = vsub.f32 1.5, %v812_v30  ;;  %v1998_v30 = vpack.i.bf16 %v2464_v26, %v2458_v25 }
 0x709   :  { %v825_v33 = vadd.f32 %v824_v27, %v822_v31  ;;  %v881_v46 = vpop.permute.xlu0 %880 }
 0x70a   :  { %v814_v34 = vmul.f32 %v2046_v19, %v813_v32 }
 0x70b   :  { %1885 = vmatmul.msk.f32.vlgmr.msra.gmra.mxu2 %vm103_vm5, %v825_v33 }
 0x70c   :  { %v818_v35 = vsel %vm817_vm7, %v2046_v19, %v814_v34 }
 0x70d   :  { %v820_v36 = vmul.f32 %v818_v35, %v786_v7 }
 0x70e   :  { %v883_v45 = vpop.permute.xlu1 %882 }
 0x70f   :  { %v823_v41 = vmul.f32 %v821_v22, %v820_v36  ;;  %1889 = vmatpush.xpose.msk.msra.mxu3 %vm888_vm8, %v883_v45  ;;  %v2446_v22 = vld [vmem:[%s2675_s5 + $0x70] sm:$0xff] }
 0x710   :  { %1008 = vmatpush.msrb.mxu0 %v2446_v22 }
 0x711   :  { %v826_v42 = vadd.f32 %v824_v27, %v823_v41  ;;  %v1993_v27 = vpack.i.bf16 %v2452_v24, %v2446_v22 }
 0x712   :  { %1009 = vmatpush.msrb.mxu0 %v2452_v24 }
 0x713   :  { %1886 = vmatmul.msk.f32.gmra.mxu2 %vm103_vm5, %v826_v42  ;;  %1890 = vmatpush.xpose.msk.msra.mxu3 %vm888_vm8, %v881_v46 }
 0x714   :  { %1010 = vmatpush.msrb.mxu0 %v2458_v25 }
 0x716   :  { %1011 = vmatpush.msrb.mxu0 %v2464_v26 }
 0x78e   :  { %v851_v49 = vpop.f32.mrf.mxu2 }
 0x78f   :  { %v852_v50 = vadd.f32 %v851_v49, %v827_v47 }
 0x791   :  { %v859_v51 = vmul.f32 0.044715, %v852_v50  ;;  %v857_v38 = vmul.f32 0.5, %v852_v50 }
 0x793   :  { %v861_v52 = vmul.f32 %v859_v51, %v852_v50 }
 0x795   :  { %v863_v53 = vmul.f32 %v861_v52, %v852_v50 }
 0x796   :  { %v854_v54 = vpop.f32.mrf.mxu2 }
 0x797   :  { %v865_v55 = vadd.f32 %v863_v53, %v852_v50  ;;  %v855_v56 = vadd.f32 %v854_v54, %v827_v47  ;;  %v972_v50 = vperm.slane %v2279_v29, 6  ;;  %v975_v54 = vperm.slane %v2279_v29, 7  ;;  %v2486_v29 = vld [vmem:[%s2676_s6 + $0x8] sm:$0xff] }
 0x799   :  { %v867_v57 = vmul.f32 0.7978846, %v865_v55  ;;  %v860_v58 = vmul.f32 0.044715, %v855_v56  ;;  %v858_v23 = vmul.f32 0.5, %v855_v56 }
 0x79b   :  { %2047 = vtanh.f32 %v867_v57  ;;  %v862_v1 = vmul.f32 %v860_v58, %v855_v56 }
 0x79d   :  { %v864_v2 = vmul.f32 %v862_v1, %v855_v56 }
 0x79f   :  { %v866_v3 = vadd.f32 %v864_v2, %v855_v56 }
 0x7a1   :  { %v2048_v5 = vpop.eup %2047  ;;  %v868_v37 = vmul.f32 0.7978846, %v866_v3 }
 0x7a2   :  { %v871_v39 = vadd.f32 1.0, %v2048_v5 }
 0x7a3   :  { %2049 = vtanh.f32 %v868_v37 }
 0x7a4   :  { %v873_v6 = vmul.f32 %v871_v39, %v857_v38  ;;  %v989_v38 = vperm.slane %v2486_v29, 0 }
 0x7a6   :  { %1891 = vmatmul.msk.f32.vlgmr.msra.gmra.mxu3 %vm888_vm8, %v873_v6 }
 0x7a9   :  { %v2050_v40 = vpop.eup %2049 }
 0x7aa   :  { %v872_v7 = vadd.f32 1.0, %v2050_v40 }
 0x7ac   :  { %v874_v8 = vmul.f32 %v872_v7, %v858_v23 }
 0x7ae   :  { %1892 = vmatmul.msk.f32.gmra.mxu3 %vm888_vm8, %v874_v8 }
 0x829   :  { %v920_v28 = vpop.f32.mrf.mxu3 }
 0x82a   :  { %v921_v11 = vadd.f32 %v920_v28, %v875_v10 }
 0x82c   :  { %v926_v12 = vadd.f32 %v921_v11, %v825_v33 }
 0x82e   :  { %v928_v13 = vsel %vm103_vm5, %v926_v12, 0.0 }
 0x82f   :  { %929 = vadd.xlane.f32.xlu2 %v928_v13 }
 0x831   :  { %v923_v59 = vpop.f32.mrf.mxu3 }
 0x832   :  { %v924_v60 = vadd.f32 %v923_v59, %v875_v10 }
 0x834   :  { %v927_v63 = vadd.f32 %v924_v60, %v826_v42 }
 0x836   :  { %v931_v61 = vsel %vm103_vm5, %v927_v63, 0.0 }
 0x837   :  { %932 = vadd.xlane.f32.xlu1 %v931_v61 }
 0x8a2   :  { %v930_v62 = vpop.xlane.xlu2 %929 }
 0x8a3   :  { %v934_v0 = vmul.f32 %v930_v62, %v2226_v48 }
 0x8a5   :  { %v936_v14 = vsub.f32 %v926_v12, %v934_v0 }
 0x8a7   :  { %v938_v15 = vmul.f32 %v936_v14, %v936_v14 }
 0x8a9   :  { %v940_v16 = vsel %vm103_vm5, %v938_v15, 0.0 }
 0x8aa   :  { %v933_v17 = vpop.xlane.xlu1 %932  ;;  %941 = vadd.xlane.f32.xlu0 %v940_v16 }
 0x8ab   :  { %v935_v18 = vmul.f32 %v933_v17, %v2226_v48 }
 0x8ad   :  { %v937_v19 = vsub.f32 %v927_v63, %v935_v18 }
 0x8af   :  { %v939_v20 = vmul.f32 %v937_v19, %v937_v19 }
 0x8b1   :  { %v943_v21 = vsel %vm103_vm5, %v939_v20, 0.0 }
 0x8b2   :  { %944 = vadd.xlane.f32.xlu2 %v943_v21 }
 0x91d   :  { %v942_v31 = vpop.xlane.xlu0 %941 }
 0x91e   :  { %v946_v32 = vmul.f32 %v942_v31, %v2226_v48 }
 0x920   :  { %v948_v33 = vadd.f32 1e-12, %v946_v32 }
 0x922   :  { %2051 = vrsqrt.f32 %v948_v33  ;;  %vm956_vm10 = vweird.f32 %v948_v33 }
 0x925   :  { %v945_v34 = vpop.xlane.xlu2 %944 }
 0x926   :  { %v947_v35 = vmul.f32 %v945_v34, %v2226_v48 }
 0x928   :  { %v2052_v36 = vpop.eup %2051  ;;  %v949_v41 = vadd.f32 1e-12, %v947_v35 }
 0x929   :  { %v951_v42 = vmul.f32 %v2052_v36, %v948_v33  ;;  %vm957_vm9 = vweird.f32 %v2052_v36 }
 0x92a   :  { %2053 = vrsqrt.f32 %v949_v41  ;;  %vm958_vm11 = vmor %vm956_vm10, %vm957_vm9  ;;  %vm966_vm13 = vweird.f32 %v949_v41 }
 0x92b   :  { %v952_v43 = vmul.f32 %v2052_v36, %v951_v42 }
 0x92d   :  { %v953_v44 = vmul.f32 0.5, %v952_v43 }
 0x92f   :  { %v954_v45 = vsub.f32 1.5, %v953_v44 }
 0x930   :  { %v2054_v46 = vpop.eup %2053 }
 0x931   :  { %v955_v47 = vmul.f32 %v2052_v36, %v954_v45  ;;  %v961_v49 = vmul.f32 %v2054_v46, %v949_v41  ;;  %vm967_vm12 = vweird.f32 %v2054_v46 }
 0x932   :  { %vm968_vm1 = vmor %vm966_vm13, %vm967_vm12  ;;  %vm1841_vm13 = vcmask 1040384  }
 0x933   :  { %v959_v51 = vsel %vm958_vm11, %v2052_v36, %v955_v47  ;;  %v962_v52 = vmul.f32 %v2054_v46, %v961_v49 }
 0x934   :  { %v970_v53 = vmul.f32 %v959_v51, %v936_v14 }
 0x935   :  { %v963_v55 = vmul.f32 0.5, %v962_v52 }
 0x936   :  { %v973_v56 = vmul.f32 %v972_v50, %v970_v53 }
 0x937   :  { %v964_v57 = vsub.f32 1.5, %v963_v55 }
 0x938   :  { %v2475_v58 = vadd.f32 %v975_v54, %v973_v56 }
 0x939   :  { %v965_v1 = vmul.f32 %v2054_v46, %v964_v57 }
 0x93a   :  { %1902 = vmatmul.msk.f32.vlgmr.msrb.gmra.mxu0 %vm103_vm5, %v2475_v58 }
 0x93b   :  { %v969_v2 = vsel %vm968_vm1, %v2054_v46, %v965_v1 }
 0x93c   :  { %v971_v3 = vmul.f32 %v969_v2, %v937_v19 }
 0x93e   :  { %v974_v5 = vmul.f32 %v972_v50, %v971_v3 }
 0x940   :  { %v2479_v37 = vadd.f32 %v975_v54, %v974_v5 }
 0x942   :  { %1903 = vmatmul.msk.f32.gmra.mxu0 %vm103_vm5, %v2479_v37 }
 0x9b7   :  { %v1013_v39 = vpop.f32.mrf.mxu0 }
 0x9b8   :  { %v1014_v6 = vadd.f32 %v1013_v39, %v989_v38 }
 0x9ba   :  { %1021 = vrot.lane.b32.xlu2 %v1014_v6, %s2104_s28  ;;  %1025 = vrot.lane.b32.xlu1 %v1014_v6, %s2106_s30 }
 0x9bf   :  { %v1016_v40 = vpop.f32.mrf.mxu0 }
 0x9c0   :  { %v2491_v23 = vadd.f32 %v1016_v40, %v989_v38 }
 0x9c2   :  { %1029 = vrot.lane.b32.xlu2 %v1014_v6, %s2105_s29  ;;  %1031 = vrot.lane.b32.xlu1 %v2491_v23, %s2105_s29 }
 0x9c3   :  { %1027 = vrot.lane.b32.xlu0 %v2491_v23, %s2106_s30 }
 0x9ca   :  { %1033 = vrot.lane.b32.xlu2 %v1014_v6, %s2107_s8 }
 0x9cb   :  { %1023 = vrot.lane.b32.xlu0 %v2491_v23, %s2104_s28 }
 0x9d3   :  { %1059 = vrot.lane.b32.xlu0 %v2491_v23, %s2107_s8 }
 0xa14   :  { %v1022_v7 = vpop.permute.xlu2 %1021 }
 0xa15   :  { %1085 = vrot.lane.b32.xlu0 %v1022_v7, %s2107_s8  ;;  %v1978_v10 = vpack.i.bf16 %v1022_v7, %v1014_v6 }
 0xa1c   :  { %v2504_v8 = vpop.permute.xlu2 %1029 }
 0xa1d   :  { %1189 = vrot.lane.b32.xlu0 %v2504_v8, %s2107_s8 }
 0xa24   :  { %v1034_v28 = vpop.permute.xlu2 %1033 }
 0xa25   :  { %1979 = vrot.lane.b32.xlu0 %v1978_v10, %s2108_s9  ;;  %1904 = vmatpush.xpose.msk.msra.mxu1 %vm226_vm14, %v1034_v28 }
 0xa28   :  { %1905 = vmatmul.msk.f32.vlgmr.msra.gmra.mxu1 %vm226_vm14, %v1014_v6 }
 0xa2c   :  { %v2511_v11 = vpop.permute.xlu1 %1025 }
 0xa2d   :  { %1137 = vrot.lane.b32.xlu1 %v2511_v11, %s2107_s8 }
 0xa34   :  { %v2519_v13 = vpop.permute.xlu1 %1031 }
 0xa35   :  { %v2515_v12 = vpop.permute.xlu0 %1027 }
 0xa36   :  { %1163 = vrot.lane.b32.xlu2 %v2515_v12, %s2107_s8 }
 0xa3d   :  { %v1024_v59 = vpop.permute.xlu0 %1023 }
 0xa3e   :  { %1215 = vrot.lane.b32.xlu2 %v2519_v13, %s2107_s8  ;;  %1111 = vrot.lane.b32.xlu1 %v1024_v59, %s2107_s8  ;;  %v1988_v51 = vpack.i.bf16 %v2504_v8, %v1024_v59 }
 0xa45   :  { %v1060_v60 = vpop.permute.xlu0 %1059 }
 0xa46   :  { %1906 = vmatpush.xpose.msk.msrb.mxu2 %vm226_vm14, %v1060_v60 }
 0xa49   :  { %1907 = vmatmul.msk.f32.vlgmr.msrb.gmra.mxu2 %vm226_vm14, %v2491_v23 }
 0xa87   :  { %v1086_v63 = vpop.permute.xlu0 %1085 }
 0xa88   :  { %1908 = vmatpush.xpose.msk.msra.mxu0 %vm226_vm14, %v1086_v63 }
 0xa8b   :  { %1909 = vmatmul.msk.f32.vlgmr.msra.gmra.mxu0 %vm226_vm14, %v1022_v7 }
 0xa8f   :  { %v1190_v61 = vpop.permute.xlu0 %1189 }
 0xa90   :  { %v1164_v62 = vpop.permute.xlu2 %1163  ;;  %1916 = vmatpush.xpose.msk.msrb.mxu0 %vm226_vm14, %v1190_v61 }
 0xa91   :  { %1914 = vmatpush.xpose.msk.msrb.mxu3 %vm226_vm14, %v1164_v62 }
 0xa93   :  { %1917 = vmatmul.msk.f32.vlgmr.msrb.gmra.mxu0 %vm226_vm14, %v2504_v8 }
 0xa94   :  { %1915 = vmatmul.msk.f32.vlgmr.msrb.gmra.mxu3 %vm226_vm14, %v2515_v12 }
 0xa97   :  { %v1980_v0 = vpop.permute.xlu0 %1979 }
 0xa98   :  { %v1982_v14 = vunpack.i.h.bf16 %v1980_v0  ;;  %v1981_v15 = vunpack.i.l.bf16 %v1980_v0  ;;  %v1216_v31 = vpop.permute.xlu2 %1215 }
 0xa9a   :  { %1370 = vmatpush.msra.mxu0 %v1982_v14 }
 0xa9f   :  { %v1138_v16 = vpop.permute.xlu1 %1137 }
 0xaa0   :  { %1912 = vmatpush.xpose.msk.msra.mxu2 %vm226_vm14, %v1138_v16 }
 0xaa3   :  { %1913 = vmatmul.msk.f32.vlgmr.msra.gmra.mxu2 %vm226_vm14, %v2511_v11 }
 0xaa4   :  { %1318 = vmatpush.msrb.mxu2 %v1981_v15 }
 0xaa5   :  { %v1056_v17 = vpop.f32.mrf.mxu1 }
 0xaa6   :  { %v1057_v18 = vadd.f32 %v1056_v17, %v2333_v4 }
 0xaa8   :  { %v1241_v19 = vmul.f32 1.442695, %v1057_v18 }
 0xaaa   :  { %2055 = vpow2.f32 %v1241_v19 }
 0xab0   :  { %v2056_v20 = vpop.eup %2055  ;;  %v1112_v21 = vpop.permute.xlu1 %1111 }
 0xab1   :  { %1910 = vmatpush.xpose.msk.msrb.mxu1 %vm226_vm14, %v1112_v21  ;;  %v1257_v32 = vsel %vm226_vm14, %v2056_v20, 0.0 }
 0xab2   :  { %1258 = vadd.xlane.f32.xlu1 %v1257_v32 }
 0xab4   :  { %1911 = vmatmul.msk.f32.vlgmr.msrb.gmra.mxu1 %vm226_vm14, %v1024_v59 }
 0xab5   :  { %1918 = vmatpush.xpose.msk.msra.mxu1 %vm226_vm14, %v1216_v31 }
 0xabc   :  { %1919 = vmatmul.msk.f32.vlgmr.msra.gmra.mxu1 %vm226_vm14, %v2519_v13 }
 0xacc   :  { %v1082_v33 = vpop.f32.mrf.mxu2 }
 0xacd   :  { %v1083_v34 = vadd.f32 %v1082_v33, %v2336_v9 }
 0xacf   :  { %v1243_v35 = vmul.f32 1.442695, %v1083_v34 }
 0xad1   :  { %2057 = vpow2.f32 %v1243_v35 }
 0xad7   :  { %v2546_v36 = vpop.eup %2057 }
 0xad8   :  { %v1260_v41 = vsel %vm226_vm14, %v2546_v36, 0.0 }
 0xad9   :  { %1261 = vadd.xlane.f32.xlu2 %v1260_v41 }
 0xb08   :  { %v1108_v42 = vpop.f32.mrf.mxu0 }
 0xb09   :  { %v1109_v43 = vadd.f32 %v1108_v42, %v2333_v4 }
 0xb0b   :  { %v1245_v44 = vmul.f32 1.442695, %v1109_v43 }
 0xb0d   :  { %2059 = vpow2.f32 %v1245_v44 }
 0xb10   :  { %v1212_v49 = vpop.f32.mrf.mxu0 }
 0xb11   :  { %v1213_v53 = vadd.f32 %v1212_v49, %v2333_v4 }
 0xb13   :  { %v2060_v45 = vpop.eup %2059  ;;  %v1253_v56 = vmul.f32 1.442695, %v1213_v53 }
 0xb14   :  { %v1263_v46 = vsel %vm226_vm14, %v2060_v45, 0.0 }
 0xb15   :  { %1264 = vadd.xlane.f32.xlu0 %v1263_v46 }
 0xb17   :  { %v1186_v2 = vpop.f32.mrf.mxu3 }
 0xb18   :  { %v1187_v38 = vadd.f32 %v1186_v2, %v2336_v9 }
 0xb1a   :  { %v1251_v40 = vmul.f32 1.442695, %v1187_v38 }
 0xb25   :  { %v1259_v47 = vpop.xlane.xlu1 %1258 }
 0xb26   :  { %2061 = vrcp.f32 %v1259_v47  ;;  %v1160_v50 = vpop.f32.mrf.mxu2 }
 0xb27   :  { %v1161_v52 = vadd.f32 %v1160_v50, %v2333_v4 }
 0xb29   :  { %v1249_v54 = vmul.f32 1.442695, %v1161_v52  ;;  %1989 = vrot.lane.b32.xlu0 %v1988_v51, %s2108_s9 }
 0xb2b   :  { %2063 = vpow2.f32 %v1249_v54 }
 0xb2c   :  { %v2062_v55 = vpop.eup %2061  ;;  %2065 = vpow2.f32 %v1253_v56 }
 0xb2d   :  { %v1289_v57 = vmul.f32 %v2062_v55, %v2056_v20 }
 0xb2f   :  { %1920 = vmatmul.msk.f32.vlgmr.msrb.gmra.mxu2 %vm226_vm14, %v1289_v57 }
 0xb31   :  { %v2557_v1 = vpop.eup %2063  ;;  %v1134_v3 = vpop.f32.mrf.mxu1  ;;  %1479 = vrot.lane.b32.xlu0 %v2519_v13, %s2108_s9 }
 0xb32   :  { %v1135_v5 = vadd.f32 %v1134_v3, %v2336_v9  ;;  %v1269_v4 = vsel %vm226_vm14, %v2557_v1, 0.0  ;;  %v2066_v6 = vpop.eup %2065 }
 0xb33   :  { %1270 = vadd.xlane.f32.xlu1 %v1269_v4  ;;  %v1275_v8 = vsel %vm226_vm14, %v2066_v6, 0.0 }
 0xb34   :  { %v1247_v39 = vmul.f32 1.442695, %v1135_v5 }
 0xb36   :  { %2067 = vpow2.f32 %v1247_v39 }
 0xb37   :  { %2069 = vpow2.f32 %v1251_v40 }
 0xb39   :  { %v1238_v7 = vpop.f32.mrf.mxu1  ;;  %1994 = vrot.lane.b32.xlu0 %v1993_v27, %s2109_s2 }
 0xb3a   :  { %v1239_v28 = vadd.f32 %v1238_v7, %v2336_v9  ;;  %v1983_v9 = vpack.i.bf16 %v2511_v11, %v2491_v23 }
 0xb3b   :  { %1276 = vadd.xlane.f32.xlu1 %v1275_v8 }
 0xb3c   :  { %v2068_v10 = vpop.eup %2067  ;;  %v1255_v59 = vmul.f32 1.442695, %v1239_v28 }
 0xb3d   :  { %v1266_v13 = vsel %vm226_vm14, %v2068_v10, 0.0  ;;  %v2070_v60 = vpop.eup %2069 }
 0xb3e   :  { %1267 = vadd.xlane.f32.xlu2 %v1266_v13  ;;  %2071 = vpow2.f32 %v1255_v59  ;;  %v1272_v22 = vsel %vm226_vm14, %v2070_v60, 0.0 }
 0xb41   :  { %1999 = vrot.lane.b32.xlu0 %v1998_v30, %s2109_s2 }
 0xb44   :  { %v2072_v24 = vpop.eup %2071 }
 0xb45   :  { %v1278_v27 = vsel %vm226_vm14, %v2072_v24, 0.0 }
 0xb46   :  { %1273 = vadd.xlane.f32.xlu2 %v1272_v22 }
 0xb4c   :  { %v1262_v23 = vpop.xlane.xlu2 %1261 }
 0xb4e   :  { %1279 = vadd.xlane.f32.xlu2 %v1278_v27 }
 0xb54   :  { %1984 = vrot.lane.b32.xlu1 %v1983_v9, %s2108_s9 }
 0xb66   :  { %1427 = vrot.lane.b32.xlu2 %v2515_v12, %s2108_s9 }
 0xb88   :  { %v1265_v63 = vpop.xlane.xlu0 %1264 }
 0xb89   :  { %2073 = vrcp.f32 %v1265_v63 }
 0xb8f   :  { %v2074_v25 = vpop.eup %2073 }
 0xb90   :  { %v1291_v26 = vmul.f32 %v2074_v25, %v2060_v45 }
 0xb92   :  { %1922 = vmatmul.msk.f32.vlgmr.msra.gmra.mxu0 %vm226_vm14, %v1291_v26 }
 0xb9b   :  { %v1990_v30 = vpop.permute.xlu0 %1989 }
 0xb9c   :  { %v1992_v61 = vunpack.i.h.bf16 %v1990_v30  ;;  %v1991_v62 = vunpack.i.l.bf16 %v1990_v30 }
 0xb9e   :  { %1396 = vmatpush.msrb.mxu1 %v1991_v62  ;;  %1474 = vmatpush.msrb.mxu0 %v1992_v61 }
 0xba3   :  { %v1480_v0 = vpop.permute.xlu0 %1479 }
 0xba4   :  { %1500 = vmatpush.msra.mxu1 %v1480_v0 }
 0xba6   :  { %v1271_v14 = vpop.xlane.xlu1 %1270 }
 0xbab   :  { %v1995_v55 = vpop.permute.xlu0 %1994 }
 0xbac   :  { %v1997_v56 = vunpack.i.h.bf16 %v1995_v55  ;;  %v1996_v57 = vunpack.i.l.bf16 %v1995_v55 }
 0xbae   :  { %v1277_v11 = vpop.xlane.xlu1 %1276 }
 0xbaf   :  { %2075 = vrcp.f32 %v1277_v11 }
 0xbb1   :  { %v1268_v15 = vpop.xlane.xlu2 %1267 }
 0xbb2   :  { %2077 = vrcp.f32 %v1268_v15  ;;  %v1320_v50 = vpop.f32.mrf.mxu2 }
 0xbb3   :  { %2079 = vrcp.f32 %v1262_v23 }
 0xbb4   :  { %2081 = vrcp.f32 %v1271_v14 }
 0xbb5   :  { %v2076_v12 = vpop.eup %2075 }
 0xbb6   :  { %v1295_v16 = vmul.f32 %v2076_v12, %v2066_v6 }
 0xbb8   :  { %v2078_v17 = vpop.eup %2077  ;;  %1926 = vmatmul.msk.f32.vlgmr.msrb.gmra.mxu0 %vm226_vm14, %v1295_v16 }
 0xbb9   :  { %v1292_v18 = vmul.f32 %v2078_v17, %v2068_v10  ;;  %v1274_v19 = vpop.xlane.xlu2 %1273  ;;  %v2080_v21 = vpop.eup %2079  ;;  %v1898_v17 = vld [vmem:[%s2675_s5 + $0x68] sm:$0xff] }
 0xbba   :  { %v2082_v31 = vpop.eup %2081  ;;  %v1290_v41 = vmul.f32 %v2080_v21, %v2546_v36 }
 0xbbb   :  { %1923 = vmatmul.msk.f32.vlgmr.msrb.gmra.mxu1 %vm226_vm14, %v1292_v18  ;;  %v1293_v42 = vmul.f32 %v2082_v31, %v2557_v1  ;;  %v2000_v1 = vpop.permute.xlu0 %1999  ;;  %v1896_v18 = vld [vmem:[%s2675_s5 + $0x58] sm:$0xff] }
 0xbbc   :  { %v2002_v2 = vunpack.i.h.bf16 %v2000_v1  ;;  %v2001_v3 = vunpack.i.l.bf16 %v2000_v1 }
 0xbc1   :  { %v1280_v20 = vpop.xlane.xlu2 %1279 }
 0xbc2   :  { %2083 = vrcp.f32 %v1280_v20 }
 0xbc3   :  { %2085 = vrcp.f32 %v1274_v19  ;;  %v1894_v19 = vld [vmem:[%s2675_s5 + $0x48] sm:$0xff] }
 0xbc6   :  { %v1985_v32 = vpop.permute.xlu1 %1984 }
 0xbc7   :  { %v1987_v33 = vunpack.i.h.bf16 %v1985_v32  ;;  %v1986_v34 = vunpack.i.l.bf16 %v1985_v32 }
 0xbc8   :  { %v2084_v35 = vpop.eup %2083 }
 0xbc9   :  { %v1296_v43 = vmul.f32 %v2084_v35, %v2072_v24  ;;  %v1428_v44 = vpop.permute.xlu2 %1427  ;;  %1344 = vmatpush.msra.mxu3 %v1986_v34  ;;  %1422 = vmatpush.msra.mxu2 %v1987_v33  ;;  %v2086_v45 = vpop.eup %2085 }
 0xbca   :  { %1921 = vmatmul.msk.f32.vlgmr.msra.gmra.mxu3 %vm226_vm14, %v1290_v41  ;;  %1924 = vmatmul.msk.f32.vlgmr.msra.gmra.mxu2 %vm226_vm14, %v1293_v42  ;;  %v1294_v46 = vmul.f32 %v2086_v45, %v2070_v60  ;;  %v1535_v60 = vperm.slane %v2486_v29, 1 }
 0xbcb   :  { %1448 = vmatpush.msrb.mxu3 %v1428_v44  ;;  %1927 = vmatmul.msk.f32.vlgmr.msra.gmra.mxu1 %vm226_vm14, %v1296_v43 }
 0xbcc   :  { %1570 = vmatpush.msrb.mxu2 %v1996_v57 }
 0xbce   :  { %1571 = vmatpush.msrb.mxu2 %v1997_v56 }
 0xbd0   :  { %1572 = vmatpush.msrb.mxu2 %v2001_v3 }
 0xbd2   :  { %1925 = vmatmul.msk.f32.vlgmr.msrb.gmra.mxu3 %vm226_vm14, %v1294_v46  ;;  %1573 = vmatpush.msrb.mxu2 %v2002_v2 }
 0xc0f   :  { %v1372_v47 = vpop.f32.mrf.mxu0 }
 0xc10   :  { %1507 = vrot.lane.b32.xlu1 %v1372_v47, %s2110_s12 }
 0xc35   :  { %v1476_v36 = vpop.f32.mrf.mxu0 }
 0xc36   :  { %1523 = vrot.lane.b32.xlu2 %v1476_v36, %s2112_s14  ;;  %v1627_v36 = vperm.slane %v2486_v29, 2 }
 0xc38   :  { %v1398_v49 = vpop.f32.mrf.mxu1 }
 0xc39   :  { %1509 = vrot.lane.b32.xlu0 %v1398_v49, %s2110_s12 }
 0xc48   :  { %v1502_v51 = vpop.f32.mrf.mxu1 }
 0xc49   :  { %1525 = vrot.lane.b32.xlu2 %v1502_v51, %s2112_s14 }
 0xc4d   :  { %v1346_v52 = vpop.f32.mrf.mxu3  ;;  %v1424_v53 = vpop.f32.mrf.mxu2 }
 0xc4e   :  { %1515 = vrot.lane.b32.xlu1 %v1424_v53, %s2111_s13 }
 0xc55   :  { %v1450_v54 = vpop.f32.mrf.mxu3 }
 0xc56   :  { %1517 = vrot.lane.b32.xlu1 %v1450_v54, %s2111_s13 }
 0xc82   :  { %v1508_v5 = vpop.permute.xlu1 %1507 }
 0xc83   :  { %v1529_v4 = vsel %vm226_vm14, %v1320_v50, %v1508_v5 }
 0xc90   :  { %v1524_v39 = vpop.permute.xlu2 %1523 }
 0xca3   :  { %v1526_v28 = vpop.permute.xlu2 %1525 }
 0xcab   :  { %v1510_v7 = vpop.permute.xlu0 %1509 }
 0xcac   :  { %v1530_v8 = vsel %vm226_vm14, %v1346_v52, %v1510_v7  ;;  %v1630_v52 = vperm.slane %v2486_v29, 3 }
 0xcc0   :  { %v1516_v38 = vpop.permute.xlu1 %1515 }
 0xcc1   :  { %v1531_v6 = vsel %vm723_vm15, %v1529_v4, %v1516_v38 }
 0xcc2   :  { %v1533_v40 = vsel %vm726_vm0, %v1531_v6, %v1524_v39 }
 0xcc3   :  { %1928 = vmatmul.msk.f32.vlgmr.msrb.gmra.mxu2 %vm103_vm5, %v1533_v40  ;;  %v1633_v40 = vperm.slane %v2486_v29, 4 }
 0xcc8   :  { %v1518_v10 = vpop.permute.xlu1 %1517 }
 0xcc9   :  { %v1532_v13 = vsel %vm723_vm15, %v1530_v8, %v1518_v10 }
 0xcca   :  { %v1534_v59 = vsel %vm726_vm0, %v1532_v13, %v1526_v28 }
 0xccb   :  { %1929 = vmatmul.msk.f32.gmra.mxu2 %vm103_vm5, %v1534_v59 }
 0xd46   :  { %v1575_v22 = vpop.f32.mrf.mxu2 }
 0xd47   :  { %v1576_v24 = vadd.f32 %v1575_v22, %v1535_v60 }
 0xd49   :  { %v1581_v27 = vadd.f32 %v1576_v24, %v2475_v58 }
 0xd4b   :  { %v1583_v9 = vsel %vm103_vm5, %v1581_v27, 0.0 }
 0xd4c   :  { %1584 = vadd.xlane.f32.xlu0 %v1583_v9 }
 0xd4e   :  { %v1578_v63 = vpop.f32.mrf.mxu2 }
 0xd4f   :  { %v1579_v25 = vadd.f32 %v1578_v63, %v1535_v60 }
 0xd51   :  { %v1582_v26 = vadd.f32 %v1579_v25, %v2479_v37  ;;  %v1900_v37 = vld [vmem:[%s2675_s5 + $0x78] sm:$0xff] }
 0xd52   :  { %1652 = vmatpush.msra.mxu3 %v1900_v37 }
 0xd53   :  { %v1586_v30 = vsel %vm103_vm5, %v1582_v26, 0.0 }
 0xd54   :  { %1587 = vadd.xlane.f32.xlu1 %v1586_v30  ;;  %1653 = vmatpush.msra.mxu3 %v1898_v17 }
 0xd56   :  { %1654 = vmatpush.msra.mxu3 %v1896_v18 }
 0xd58   :  { %1655 = vmatpush.msra.mxu3 %v1894_v19 }
 0xd6d   :  { %1692 = vrot.lane.b32.xlu1 %v1900_v37, %s2108_s9 }
 0xd75   :  { %1686 = vrot.lane.b32.xlu1 %v1894_v19, %s2108_s9 }
 0xdbf   :  { %v1585_v61 = vpop.xlane.xlu0 %1584 }
 0xdc0   :  { %v1589_v62 = vmul.f32 %v1585_v61, %v2226_v48 }
 0xdc2   :  { %v1591_v0 = vsub.f32 %v1581_v27, %v1589_v62 }
 0xdc4   :  { %v1593_v14 = vmul.f32 %v1591_v0, %v1591_v0 }
 0xdc6   :  { %v1595_v23 = vsel %vm103_vm5, %v1593_v14, 0.0 }
 0xdc7   :  { %1596 = vadd.xlane.f32.xlu2 %v1595_v23  ;;  %v1588_v11 = vpop.xlane.xlu1 %1587 }
 0xdc8   :  { %v1590_v58 = vmul.f32 %v1588_v11, %v2226_v48 }
 0xdca   :  { %v1592_v15 = vsub.f32 %v1582_v26, %v1590_v58 }
 0xdcc   :  { %v1594_v12 = vmul.f32 %v1592_v15, %v1592_v15 }
 0xdce   :  { %v1598_v16 = vsel %vm103_vm5, %v1594_v12, 0.0 }
 0xdcf   :  { %1599 = vadd.xlane.f32.xlu0 %v1598_v16 }
 0xddf   :  { %1690 = vrot.lane.b32.xlu2 %v1898_v17, %s2108_s9  ;;  %v1693_v4 = vpop.permute.xlu1 %1692 }
 0xde0   :  { %1932 = vmatpush.xpose.msk.msra.mxu0 %vm888_vm8, %v1693_v4  ;;  %v1777_v4 = vperm.slane %v2486_v29, 6 }
 0xde3   :  { %1688 = vrot.lane.b32.xlu0 %v1896_v18, %s2108_s9 }
 0xde7   :  { %v1687_v6 = vpop.permute.xlu1 %1686 }
 0xe3a   :  { %v1597_v20 = vpop.xlane.xlu2 %1596 }
 0xe3b   :  { %v1601_v21 = vmul.f32 %v1597_v20, %v2226_v48 }
 0xe3d   :  { %v1603_v31 = vadd.f32 1e-12, %v1601_v21 }
 0xe3f   :  { %2087 = vrsqrt.f32 %v1603_v31  ;;  %vm1611_vm15 = vweird.f32 %v1603_v31 }
 0xe42   :  { %v1600_v32 = vpop.xlane.xlu0 %1599  ;;  %v1691_v38 = vpop.permute.xlu2 %1690 }
 0xe43   :  { %v1602_v33 = vmul.f32 %v1600_v32, %v2226_v48  ;;  %1933 = vmatpush.xpose.msk.msra.mxu0 %vm888_vm8, %v1691_v38 }
 0xe45   :  { %v2088_v34 = vpop.eup %2087  ;;  %v1604_v35 = vadd.f32 1e-12, %v1602_v33 }
 0xe46   :  { %v1606_v41 = vmul.f32 %v2088_v34, %v1603_v31  ;;  %vm1612_vm14 = vweird.f32 %v2088_v34 }
 0xe47   :  { %2089 = vrsqrt.f32 %v1604_v35  ;;  %vm1613_vm0 = vmor %vm1611_vm15, %vm1612_vm14  ;;  %vm1621_vm3 = vweird.f32 %v1604_v35 }
 0xe48   :  { %v1607_v42 = vmul.f32 %v2088_v34, %v1606_v41 }
 0xe4a   :  { %v1608_v43 = vmul.f32 0.5, %v1607_v42 }
 0xe4c   :  { %v1609_v44 = vsub.f32 1.5, %v1608_v43 }
 0xe4d   :  { %v2090_v45 = vpop.eup %2089 }
 0xe4e   :  { %v1610_v46 = vmul.f32 %v2088_v34, %v1609_v44  ;;  %v1616_v47 = vmul.f32 %v2090_v45, %v1604_v35  ;;  %vm1622_vm2 = vweird.f32 %v2090_v45 }
 0xe4f   :  { %vm1623_vm4 = vmor %vm1621_vm3, %vm1622_vm2 }
 0xe50   :  { %v1614_v49 = vsel %vm1613_vm0, %v2088_v34, %v1610_v46  ;;  %v1617_v50 = vmul.f32 %v2090_v45, %v1616_v47 }
 0xe51   :  { %v1625_v51 = vmul.f32 %v1614_v49, %v1591_v0 }
 0xe52   :  { %v1618_v53 = vmul.f32 0.5, %v1617_v50 }
 0xe53   :  { %v1628_v54 = vmul.f32 %v1627_v36, %v1625_v51 }
 0xe54   :  { %v1619_v55 = vsub.f32 1.5, %v1618_v53 }
 0xe55   :  { %v1631_v56 = vadd.f32 %v1630_v52, %v1628_v54  ;;  %v1689_v39 = vpop.permute.xlu0 %1688 }
 0xe56   :  { %v1620_v57 = vmul.f32 %v2090_v45, %v1619_v55  ;;  %1934 = vmatpush.xpose.msk.msra.mxu0 %vm888_vm8, %v1689_v39  ;;  %v2113_v55 = vmov 8.0  }
 0xe57   :  { %1930 = vmatmul.msk.f32.vlgmr.msra.gmra.mxu3 %vm103_vm5, %v1631_v56 }
 0xe58   :  { %v1624_v1 = vsel %vm1623_vm4, %v2090_v45, %v1620_v57 }
 0xe59   :  { %v1626_v2 = vmul.f32 %v1624_v1, %v1592_v15  ;;  %v1681_v15 = vperm.slane %v2486_v29, 5 }
 0xe5a   :  { %1935 = vmatpush.xpose.msk.msra.mxu0 %vm888_vm8, %v1687_v6  ;;  %v1780_v6 = vperm.slane %v2486_v29, 7 }
 0xe5b   :  { %v1629_v3 = vmul.f32 %v1627_v36, %v1626_v2 }
 0xe5d   :  { %v1632_v5 = vadd.f32 %v1630_v52, %v1629_v3 }
 0xe5f   :  { %1931 = vmatmul.msk.f32.gmra.mxu3 %vm103_vm5, %v1632_v5 }
 0xeda   :  { %v1657_v7 = vpop.f32.mrf.mxu3 }
 0xedb   :  { %v1658_v8 = vadd.f32 %v1657_v7, %v1633_v40 }
 0xedd   :  { %v1665_v10 = vmul.f32 0.044715, %v1658_v8  ;;  %v1663_v61 = vmul.f32 0.5, %v1658_v8 }
 0xedf   :  { %v1667_v28 = vmul.f32 %v1665_v10, %v1658_v8 }
 0xee1   :  { %v1669_v13 = vmul.f32 %v1667_v28, %v1658_v8 }
 0xee2   :  { %v1660_v59 = vpop.f32.mrf.mxu3 }
 0xee3   :  { %v1671_v60 = vadd.f32 %v1669_v13, %v1658_v8  ;;  %v1661_v22 = vadd.f32 %v1660_v59, %v1633_v40 }
 0xee5   :  { %v1673_v24 = vmul.f32 0.7978846, %v1671_v60  ;;  %v1666_v27 = vmul.f32 0.044715, %v1661_v22  ;;  %v1664_v23 = vmul.f32 0.5, %v1661_v22 }
 0xee7   :  { %2091 = vtanh.f32 %v1673_v24  ;;  %v1668_v9 = vmul.f32 %v1666_v27, %v1661_v22 }
 0xee9   :  { %v1670_v63 = vmul.f32 %v1668_v9, %v1661_v22 }
 0xeeb   :  { %v1672_v25 = vadd.f32 %v1670_v63, %v1661_v22 }
 0xeed   :  { %v2092_v26 = vpop.eup %2091  ;;  %v1674_v30 = vmul.f32 0.7978846, %v1672_v25 }
 0xeee   :  { %v1677_v62 = vadd.f32 1.0, %v2092_v26 }
 0xeef   :  { %2093 = vtanh.f32 %v1674_v30 }
 0xef0   :  { %v1679_v0 = vmul.f32 %v1677_v62, %v1663_v61 }
 0xef2   :  { %1936 = vmatmul.msk.f32.vlgmr.msra.gmra.mxu0 %vm888_vm8, %v1679_v0 }
 0xef5   :  { %v2094_v14 = vpop.eup %2093 }
 0xef6   :  { %v1678_v11 = vadd.f32 1.0, %v2094_v14 }
 0xef8   :  { %v1680_v58 = vmul.f32 %v1678_v11, %v1664_v23 }
 0xefa   :  { %1937 = vmatmul.msk.f32.gmra.mxu0 %vm888_vm8, %v1680_v58 }
 0xf6f   :  { %v1725_v12 = vpop.f32.mrf.mxu0 }
 0xf70   :  { %v1726_v16 = vadd.f32 %v1725_v12, %v1681_v15 }
 0xf72   :  { %v1731_v37 = vadd.f32 %v1726_v16, %v1631_v56 }
 0xf74   :  { %v1733_v17 = vsel %vm103_vm5, %v1731_v37, 0.0 }
 0xf75   :  { %1734 = vadd.xlane.f32.xlu2 %v1733_v17 }
 0xf77   :  { %v1728_v18 = vpop.f32.mrf.mxu0 }
 0xf78   :  { %v1729_v19 = vadd.f32 %v1728_v18, %v1681_v15 }
 0xf7a   :  { %v1732_v20 = vadd.f32 %v1729_v19, %v1632_v5 }
 0xf7c   :  { %v1736_v21 = vsel %vm103_vm5, %v1732_v20, 0.0 }
 0xf7d   :  { %1737 = vadd.xlane.f32.xlu0 %v1736_v21 }
 0xfe8   :  { %v1735_v31 = vpop.xlane.xlu2 %1734 }
 0xfe9   :  { %v1739_v32 = vmul.f32 %v1735_v31, %v2226_v48 }
 0xfeb   :  { %v1741_v33 = vsub.f32 %v1731_v37, %v1739_v32  ;;  %v1783_v32 = vld [vmem:[%s2674_s4 + $0x2] sm:$0x1] }
 0xfed   :  { %v1743_v34 = vmul.f32 %v1741_v33, %v1741_v33 }
 0xfef   :  { %v1745_v35 = vsel %vm103_vm5, %v1743_v34, 0.0 }
 0xff0   :  { %v1738_v41 = vpop.xlane.xlu0 %1737  ;;  %1746 = vadd.xlane.f32.xlu0 %v1745_v35 }
 0xff1   :  { %v1740_v42 = vmul.f32 %v1738_v41, %v2226_v48 }
 0xff3   :  { %v1742_v43 = vsub.f32 %v1732_v20, %v1740_v42 }
 0xff5   :  { %v1744_v44 = vmul.f32 %v1742_v43, %v1742_v43 }
 0xff7   :  { %v1748_v45 = vsel %vm103_vm5, %v1744_v44, 0.0 }
 0xff8   :  { %1749 = vadd.xlane.f32.xlu1 %v1748_v45 }
0x1063   :  { %v1747_v46 = vpop.xlane.xlu0 %1746 }
0x1064   :  { %v1751_v47 = vmul.f32 %v1747_v46, %v2226_v48 }
0x1066   :  { %v1753_v36 = vadd.f32 1e-12, %v1751_v47 }
0x1068   :  { %2095 = vrsqrt.f32 %v1753_v36  ;;  %vm1761_vm7 = vweird.f32 %v1753_v36 }
0x106b   :  { %v1750_v49 = vpop.xlane.xlu1 %1749 }
0x106c   :  { %v1752_v50 = vmul.f32 %v1750_v49, %v2226_v48 }
0x106e   :  { %v2096_v51 = vpop.eup %2095  ;;  %v1754_v52 = vadd.f32 1e-12, %v1752_v50 }
0x106f   :  { %v1756_v53 = vmul.f32 %v2096_v51, %v1753_v36  ;;  %vm1762_vm6 = vweird.f32 %v2096_v51 }
0x1070   :  { %2097 = vrsqrt.f32 %v1754_v52  ;;  %vm1763_vm8 = vmor %vm1761_vm7, %vm1762_vm6  ;;  %vm1771_vm10 = vweird.f32 %v1754_v52 }
0x1071   :  { %v1757_v54 = vmul.f32 %v2096_v51, %v1756_v53  ;;  %2099 = vrcp.f32 %v2113_v55 }
0x1073   :  { %v1758_v56 = vmul.f32 0.5, %v1757_v54 }
0x1075   :  { %v1759_v57 = vsub.f32 1.5, %v1758_v56 }
0x1076   :  { %v2098_v1 = vpop.eup %2097 }
0x1077   :  { %v2100_v2 = vpop.eup %2099  ;;  %v1760_v3 = vmul.f32 %v2096_v51, %v1759_v57  ;;  %v1766_v5 = vmul.f32 %v2098_v1, %v1754_v52  ;;  %vm1772_vm9 = vweird.f32 %v2098_v1  ;;  %v1785_v57 = vld [vmem:[%s2674_s4 + $0x4] sm:$0x1] }
0x1078   :  { %v1794_v40 = vmul.f32 8.0, %v2100_v2  ;;  %vm1773_vm11 = vmor %vm1771_vm10, %vm1772_vm9  ;;  %vm1798_vm12 = vweird.f32 %v2100_v2 }
0x1079   :  { %v1764_v38 = vsel %vm1763_vm8, %v2096_v51, %v1760_v3  ;;  %v1767_v48 = vmul.f32 %v2098_v1, %v1766_v5 }
0x107a   :  { %v1775_v39 = vmul.f32 %v1764_v38, %v1741_v33  ;;  %v1795_v13 = vsub.f32 1.0, %v1794_v40  ;;  %v1784_v33 = vld [vmem:[%s2674_s4 + $0x3] sm:$0x1] }
0x107b   :  { %v1768_v7 = vmul.f32 0.5, %v1767_v48 }
0x107c   :  { %v1778_v8 = vmul.f32 %v1777_v4, %v1775_v39  ;;  %v1796_v25 = vmul.f32 %v2100_v2, %v1795_v13 }
0x107d   :  { %v1769_v10 = vsub.f32 1.5, %v1768_v7 }
0x107e   :  { %v1781_v28 = vadd.f32 %v1780_v6, %v1778_v8  ;;  %v1797_v0 = vadd.f32 %v2100_v2, %v1796_v25 }
0x107f   :  { %v1770_v59 = vmul.f32 %v2098_v1, %v1769_v10 }
0x1080   :  { %v1786_v60 = vsel %vm103_vm5, %v1781_v28, 0.0  ;;  %v1801_v22 = vsel %vm103_vm5, %v1781_v28, -inf  ;;  %v1799_v18 = vsel %vm1798_vm12, %v2100_v2, %v1797_v0 }
0x1081   :  { %v1774_v24 = vsel %vm1773_vm11, %v2098_v1, %v1770_v59  ;;  %v1787_v27 = vrot.slane %v1786_v60, 4  ;;  %v1802_v9 = vrot.slane %v1801_v22, 4 }
0x1082   :  { %v1776_v63 = vmul.f32 %v1774_v24, %v1742_v43 }
0x1083   :  { %v1788_v29 = vadd.f32 %v1787_v27, %v1786_v60  ;;  %v1803_v26 = vmax.f32 %v1801_v22, %v1802_v9 }
0x1084   :  { %v1779_v30 = vmul.f32 %v1777_v4, %v1776_v63 }
0x1085   :  { %v1789_v61 = vrot.slane %v1788_v29, 2  ;;  %v1804_v62 = vrot.slane %v1803_v26, 2 }
0x1086   :  { %v1782_v14 = vadd.f32 %v1780_v6, %v1779_v30 }
0x1087   :  { %v1790_v23 = vadd.f32 %v1789_v61, %v1788_v29  ;;  %v1805_v11 = vmax.f32 %v1803_v26, %v1804_v62 }
0x1088   :  { %v1816_v58 = vsel %vm103_vm5, %v1782_v14, 0.0  ;;  %v1824_v15 = vsel %vm103_vm5, %v1782_v14, -inf  ;;  %vm1811_vm5 = vcmask 253952  }
0x1089   :  { %v1791_v12 = vrot.slane %v1790_v23, 1  ;;  %v1806_v16 = vrot.slane %v1805_v11, 1  ;;  %v1817_v37 = vrot.slane %v1816_v58, 4  ;;  %v1825_v17 = vrot.slane %v1824_v15, 4 }
0x108b   :  { %v1792_v19 = vadd.f32 %v1791_v12, %v1790_v23  ;;  %v1807_v20 = vmax.f32 %v1805_v11, %v1806_v16  ;;  %v1818_v21 = vadd.f32 %v1817_v37, %v1816_v58  ;;  %v1826_v31 = vmax.f32 %v1824_v15, %v1825_v17 }
0x108d   :  { %v1800_v34 = vmul.f32 %v1799_v18, %v1792_v19  ;;  %v1819_v35 = vrot.slane %v1818_v21, 2  ;;  %v1827_v41 = vrot.slane %v1826_v31, 2  ;;  %v1809_v43 = vmul.f32 %v1807_v20, %v1784_v33 }
0x108f   :  { %v1808_v42 = vmul.f32 %v1800_v34, %v1783_v32  ;;  %v1820_v44 = vadd.f32 %v1819_v35, %v1818_v21  ;;  %v1828_v45 = vmax.f32 %v1826_v31, %v1827_v41 }
0x1091   :  { %v1810_v46 = vadd.f32 %v1809_v43, %v1808_v42  ;;  %v1821_v47 = vrot.slane %v1820_v44, 1  ;;  %v1829_v36 = vrot.slane %v1828_v45, 1 }
0x1093   :  { %v1812_v49 = vsel %vm1811_vm5, %v1810_v46, 0.0  ;;  %v1822_v50 = vadd.f32 %v1821_v47, %v1820_v44  ;;  %v1830_v51 = vmax.f32 %v1828_v45, %v1829_v36 }
0x1094   :  { %1813 = vadd.xlane.f32.xlu1 %v1812_v49 }
0x1095   :  { %v1823_v52 = vmul.f32 %v1822_v50, %v1799_v18  ;;  %v1832_v54 = vmul.f32 %v1830_v51, %v1784_v33 }
0x1097   :  { %v1831_v53 = vmul.f32 %v1823_v52, %v1783_v32 }
0x1099   :  { %v1833_v55 = vadd.f32 %v1832_v54, %v1831_v53 }
0x109b   :  { %v1834_v56 = vsel %vm1811_vm5, %v1833_v55, 0.0 }
0x109c   :  { %1835 = vadd.xlane.f32.xlu2 %v1834_v56 }
0x1107   :  { %v1814_v1 = vpop.xlane.xlu1 %1813 }
0x1108   :  { %v1815_v5 = vadd.f32 %v1814_v1, %v1785_v57 }
0x110f   :  { %v1836_v2 = vpop.xlane.xlu2 %1835 }
0x1110   :  { %v1837_v3 = vadd.f32 %v1836_v2, %v1785_v57 }
0x1112   :  { %v1839_v4 = vrot.slane %v1837_v3, 7 }
0x1114   :  { %v1842_v38 = vsel %vm1841_vm13, %v1815_v5, %v1839_v4 }
0x1115   :  { %1845 = vperm.xlu0 %1951, %v1842_v38  }
0x1187   :  { %v1846_v48 = vpop.permute.xlu0 %1845 }
0x1188   :  { %1848 = vst [vmem:[%s2678_s7] sm:$0x3] %v1846_v48 }

</bundles_post_ra>
